<compile_context>
chip_gen: v7x
topology: tpu7x:2x2x1
jax: 0.10.0
libtpu: 0.0.40
codegen_flags: <defaults>
</compile_context>

<pallas_src>
import functools
import math

import jax
import jax.numpy as jnp
from jax.experimental import pallas as pl
from jax.experimental.pallas import tpu as pltpu

# ---------------- model hyper-parameters (small, deterministic) -------------
D_MODEL = 32
N_HEADS = 4
D_HEAD = D_MODEL // N_HEADS
D_FF = 128
EPS = 1e-6

# rows inside the packed (16, 128) vector slab (biases + LayerNorm params)
_ROW_B_SELF_QKV = 0   # width 3*D
_ROW_B_SELF_O   = 1   # width D
_ROW_B_SRC_Q    = 2   # width D
_ROW_B_SRC_KV   = 3   # width 2*D
_ROW_B_SRC_O    = 4   # width D
_ROW_B_FF1      = 5   # width D_FF
_ROW_B_FF2      = 6   # width D
_ROW_LN_A       = 7   # rows 7..9, width D
_ROW_LN_B       = 10  # rows 10..12, width D
_VEC_ROWS       = 16  # padded to a sublane multiple

# leading index inside the packed (6, D, 128) weight slab
_W_SELF_QKV = 0   # uses cols [:3*D]
_W_SELF_O   = 1   # uses cols [:D]
_W_SRC_Q    = 2   # uses cols [:D]
_W_SRC_KV   = 3   # uses cols [:2*D]
_W_SRC_O    = 4   # uses cols [:D]
_W_FF1      = 5   # uses cols [:D_FF]


# ---------------- Pallas kernel ---------------------------------------------
def decoder_layer_kernel(x_ref, mem_ref, tmask_ref, smask_ref,
                         w_ref, wff2_ref, vec_ref, o_ref,
                         *, batch, t_len, s_len):
    D, H, DK = D_MODEL, N_HEADS, D_HEAD
    BT = batch * t_len
    BS = batch * s_len

    x = x_ref[...]           # (BT, D)
    mem = mem_ref[...]       # (BS, D)
    tmask = tmask_ref[...]   # (BT, BT) additive block-diag causal: 0 keep / -1e9 masked
    smask = smask_ref[...]   # (BT, BS) additive block-diag padding
    vec = vec_ref[...]       # (16, 128) biases + LayerNorm params

    def layer_norm(xv, idx):
        # torch.std is unbiased (ddof=1); eps is added to the std, not the variance.
        a = vec[_ROW_LN_A + idx:_ROW_LN_A + idx + 1, :D]
        b = vec[_ROW_LN_B + idx:_ROW_LN_B + idx + 1, :D]
        mean = jnp.mean(xv, axis=-1, keepdims=True)
        var = jnp.sum((xv - mean) ** 2, axis=-1, keepdims=True) / (D - 1)
        inv = pl.reciprocal(jnp.sqrt(var) + EPS, approx=True)   # EUP slot
        return a * (xv - mean) * inv + b

    def softmax_last(s):
        m = jnp.max(s, axis=-1, keepdims=True)
        e = jnp.exp(s - m)
        return e * pl.reciprocal(jnp.sum(e, axis=-1, keepdims=True), approx=True)

    # ---- sublayer 0: masked multi-head self-attention (pre-norm + residual) ----
    xn = layer_norm(x, 0)
    qkv = (jnp.dot(xn, w_ref[_W_SELF_QKV][:, :3 * D],
                   preferred_element_type=jnp.float32)
           + vec[_ROW_B_SELF_QKV:_ROW_B_SELF_QKV + 1, :3 * D])          # (BT, 3D)
    qkv_h = qkv.reshape(BT, 3 * H, DK).transpose(1, 0, 2)               # (3H, BT, DK)
    q, k, v = qkv_h[:H], qkv_h[H:2 * H], qkv_h[2 * H:]
    s = jnp.einsum("hqd,hkd->hqk", q, k,
                   preferred_element_type=jnp.float32)                  # (H, BT, BT); scale in Wq
    p = softmax_last(s + tmask[None, :, :])
    ctx = jnp.einsum("hqk,hkd->hqd", p, v,
                     preferred_element_type=jnp.float32)                # (H, BT, DK)
    ctx = ctx.transpose(1, 0, 2).reshape(BT, D)
    x = x + (jnp.dot(ctx, w_ref[_W_SELF_O][:, :D],
                     preferred_element_type=jnp.float32)
             + vec[_ROW_B_SELF_O:_ROW_B_SELF_O + 1, :D])

    # ---- sublayer 1: multi-head attention over encoder memory ----
    xn = layer_norm(x, 1)
    q_all = (jnp.dot(xn, w_ref[_W_SRC_Q][:, :D],
                     preferred_element_type=jnp.float32)
             + vec[_ROW_B_SRC_Q:_ROW_B_SRC_Q + 1, :D])                  # (BT, D)
    kv_all = (jnp.dot(mem, w_ref[_W_SRC_KV][:, :2 * D],
                      preferred_element_type=jnp.float32)
              + vec[_ROW_B_SRC_KV:_ROW_B_SRC_KV + 1, :2 * D])           # (BS, 2D)
    q = q_all.reshape(BT, H, DK).transpose(1, 0, 2)                     # (H, BT, DK)
    kv_h = kv_all.reshape(BS, 2 * H, DK).transpose(1, 0, 2)             # (2H, BS, DK)
    k, v = kv_h[:H], kv_h[H:]
    s = jnp.einsum("hqd,hkd->hqk", q, k,
                   preferred_element_type=jnp.float32)                  # (H, BT, BS)
    p = softmax_last(s + smask[None, :, :])
    ctx = jnp.einsum("hqk,hkd->hqd", p, v,
                     preferred_element_type=jnp.float32)
    ctx = ctx.transpose(1, 0, 2).reshape(BT, D)
    x = x + (jnp.dot(ctx, w_ref[_W_SRC_O][:, :D],
                     preferred_element_type=jnp.float32)
             + vec[_ROW_B_SRC_O:_ROW_B_SRC_O + 1, :D])

    # ---- sublayer 2: position-wise feed-forward ----
    xn = layer_norm(x, 2)
    h = jnp.maximum(jnp.dot(xn, w_ref[_W_FF1][:, :D_FF],
                            preferred_element_type=jnp.float32)
                    + vec[_ROW_B_FF1:_ROW_B_FF1 + 1, :D_FF], 0.0)
    x = x + (jnp.dot(h, wff2_ref[...],
                     preferred_element_type=jnp.float32)
             + vec[_ROW_B_FF2:_ROW_B_FF2 + 1, :D])

    # direct (BT, D) store; wrapper reshapes (no in-kernel relayout).
    o_ref[...] = x.astype(o_ref.dtype)


# ---------------- parameter packing (once per set of weights) ---------------
def pack_params(p):
    """Repack the 16 per-projection weights into 3 contiguous slabs."""
    D = D_MODEL
    scale = 1.0 / math.sqrt(D_HEAD)

    w_slab = jnp.zeros((6, D, 128), jnp.float32)
    w_slab = w_slab.at[_W_SELF_QKV, :, :3 * D].set(
        jnp.concatenate([p["self_wq"] * scale, p["self_wk"], p["self_wv"]], axis=1))
    w_slab = w_slab.at[_W_SELF_O, :, :D].set(p["self_wo"])
    w_slab = w_slab.at[_W_SRC_Q, :, :D].set(p["src_wq"] * scale)
    w_slab = w_slab.at[_W_SRC_KV, :, :2 * D].set(
        jnp.concatenate([p["src_wk"], p["src_wv"]], axis=1))
    w_slab = w_slab.at[_W_SRC_O, :, :D].set(p["src_wo"])
    w_slab = w_slab.at[_W_FF1, :, :D_FF].set(p["ff_w1"])

    vec = jnp.zeros((_VEC_ROWS, 128), jnp.float32)
    vec = vec.at[_ROW_B_SELF_QKV, :3 * D].set(
        jnp.concatenate([p["self_bq"] * scale, p["self_bk"], p["self_bv"]]))
    vec = vec.at[_ROW_B_SELF_O, :D].set(p["self_bo"])
    vec = vec.at[_ROW_B_SRC_Q, :D].set(p["src_bq"] * scale)
    vec = vec.at[_ROW_B_SRC_KV, :2 * D].set(
        jnp.concatenate([p["src_bk"], p["src_bv"]]))
    vec = vec.at[_ROW_B_SRC_O, :D].set(p["src_bo"])
    vec = vec.at[_ROW_B_FF1, :D_FF].set(p["ff_b1"])
    vec = vec.at[_ROW_B_FF2, :D].set(p["ff_b2"])
    vec = vec.at[_ROW_LN_A:_ROW_LN_A + 3, :D].set(p["ln_a"])
    vec = vec.at[_ROW_LN_B:_ROW_LN_B + 3, :D].set(p["ln_b"])

    return {"w_slab": w_slab, "w_ff2": p["ff_w2"], "vec": vec}


# ---------------- jitted forward (mask build + pallas_call) -----------------
@jax.jit
def decoder_layer_forward(x, memory, src_mask, tgt_mask, packed):
    B, T, D = x.shape
    S = memory.shape[1]
    assert D == D_MODEL

    # Block-diagonal additive masks over the folded (B*T) / (B*S) axes:
    # 0 where keep (same batch & original mask == 1), -1e9 everywhere else.
    eye = jnp.eye(B, dtype=jnp.float32)
    keep_tt = jnp.einsum("bc,bij->bicj", eye, tgt_mask).reshape(B * T, B * T)
    keep_ts = jnp.broadcast_to(
        jnp.einsum("bc,bs->bcs", eye, src_mask[:, 0, :])[:, None, :, :],
        (B, T, B, S)).reshape(B * T, B * S)
    tmask_add = (keep_tt - 1.0) * 1e9
    smask_add = (keep_ts - 1.0) * 1e9

    x2d = x.reshape(B * T, D)
    mem2d = memory.reshape(B * S, D)

    args = [x2d, mem2d, tmask_add, smask_add,
            packed["w_slab"], packed["w_ff2"], packed["vec"]]

    BT, BS = B * T, B * S
    flops = (
        2 * BT * D * (3 * D)                    # fused self QKV projection
        + 2 * N_HEADS * BT * BT * D_HEAD * 2    # self-attn scores + context
        + 2 * BT * D * D                        # self output projection
        + 2 * BT * D * D                        # src Q projection
        + 2 * BS * D * (2 * D)                  # fused src K/V projection
        + 2 * N_HEADS * BT * BS * D_HEAD * 2    # src-attn scores + context
        + 2 * BT * D * D                        # src output projection
        + 2 * BT * D * D_FF * 2                 # FFN
    )
    transcendentals = N_HEADS * BT * (BT + BS) + 6 * BT
    bytes_accessed = sum(int(a.size) * 4 for a in args) + BT * D * 4

    kernel = functools.partial(decoder_layer_kernel, batch=B, t_len=T, s_len=S)
    out = pl.pallas_call(
        kernel,
        out_shape=jax.ShapeDtypeStruct((B * T, D), jnp.float32),
        in_specs=[pl.BlockSpec(memory_space=pltpu.MemorySpace.VMEM)] * len(args),
        out_specs=pl.BlockSpec(memory_space=pltpu.MemorySpace.VMEM),
        cost_estimate=pl.CostEstimate(flops=flops, transcendentals=transcendentals,
                                      bytes_accessed=bytes_accessed),
    )(*args)
    return out.reshape(B, T, D)


# ---------------- pure-JAX reference (standard annotated-transformer math) ---
def _layer_norm_ref(x, a, b):
    mean = jnp.mean(x, axis=-1, keepdims=True)
    var = jnp.sum((x - mean) ** 2, axis=-1, keepdims=True) / (x.shape[-1] - 1)
    return a * (x - mean) / (jnp.sqrt(var) + EPS) + b


def _mha_ref(q_in, kv_in, wq, bq, wk, bk, wv, bv, wo, bo, mask):
    B, T, _ = q_in.shape
    S = kv_in.shape[1]
    q = (q_in @ wq + bq).reshape(B, T, N_HEADS, D_HEAD)
    k = (kv_in @ wk + bk).reshape(B, S, N_HEADS, D_HEAD)
    v = (kv_in @ wv + bv).reshape(B, S, N_HEADS, D_HEAD)
    scores = jnp.einsum("bqhd,bkhd->bhqk", q, k) / math.sqrt(D_HEAD)
    scores = jnp.where(mask[:, None, :, :] == 0.0, -1e9, scores)
    p = jax.nn.softmax(scores, axis=-1)
    ctx = jnp.einsum("bhqk,bkhd->bqhd", p, v).reshape(B, T, D_MODEL)
    return ctx @ wo + bo


def decoder_layer_reference(x, memory, src_mask, tgt_mask, p):
    xn = _layer_norm_ref(x, p["ln_a"][0], p["ln_b"][0])
    x = x + _mha_ref(xn, xn, p["self_wq"], p["self_bq"], p["self_wk"], p["self_bk"],
                     p["self_wv"], p["self_bv"], p["self_wo"], p["self_bo"], tgt_mask)
    xn = _layer_norm_ref(x, p["ln_a"][1], p["ln_b"][1])
    x = x + _mha_ref(xn, memory, p["src_wq"], p["src_bq"], p["src_wk"], p["src_bk"],
                     p["src_wv"], p["src_bv"], p["src_wo"], p["src_bo"], src_mask)
    xn = _layer_norm_ref(x, p["ln_a"][2], p["ln_b"][2])
    h = jnp.maximum(xn @ p["ff_w1"] + p["ff_b1"], 0.0)
    return x + h @ p["ff_w2"] + p["ff_b2"]


# ---------------- deterministic parameter init ------------------------------
def init_params(key):
    ks = jax.random.split(key, 20)
    s = 0.08

    def w(k, shape):
        return jax.random.normal(k, shape, jnp.float32) * s

    return {
        "self_wq": w(ks[0], (D_MODEL, D_MODEL)), "self_bq": w(ks[1], (D_MODEL,)),
        "self_wk": w(ks[2], (D_MODEL, D_MODEL)), "self_bk": w(ks[3], (D_MODEL,)),
        "self_wv": w(ks[4], (D_MODEL, D_MODEL)), "self_bv": w(ks[5], (D_MODEL,)),
        "self_wo": w(ks[6], (D_MODEL, D_MODEL)), "self_bo": w(ks[7], (D_MODEL,)),
        "src_wq": w(ks[8], (D_MODEL, D_MODEL)), "src_bq": w(ks[9], (D_MODEL,)),
        "src_wk": w(ks[10], (D_MODEL, D_MODEL)), "src_bk": w(ks[11], (D_MODEL,)),
        "src_wv": w(ks[12], (D_MODEL, D_MODEL)), "src_bv": w(ks[13], (D_MODEL,)),
        "src_wo": w(ks[14], (D_MODEL, D_MODEL)), "src_bo": w(ks[15], (D_MODEL,)),
        "ff_w1": w(ks[16], (D_MODEL, D_FF)), "ff_b1": w(ks[17], (D_FF,)),
        "ff_w2": w(ks[18], (D_FF, D_MODEL)), "ff_b2": w(ks[19], (D_MODEL,)),
        "ln_a": jnp.ones((3, D_MODEL), jnp.float32),
        "ln_b": jnp.zeros((3, D_MODEL), jnp.float32),
    }


if __name__ == "__main__":
    B, T, S = 2, 8, 16
    key = jax.random.PRNGKey(0)
    kx, km, kp = jax.random.split(key, 3)

    x = jax.random.normal(kx, (B, T, D_MODEL), jnp.float32)
    memory = jax.random.normal(km, (B, S, D_MODEL), jnp.float32)
    # causal target mask; source padding mask (batch 1 has 4 padded positions)
    tgt_mask = jnp.tril(jnp.ones((T, T), jnp.float32))[None].repeat(B, axis=0)
    src_len = jnp.array([S, S - 4])
    src_mask = (jnp.arange(S)[None, :] < src_len[:, None]).astype(jnp.float32)[:, None, :]
    params = init_params(kp)

    packed = jax.tree_util.tree_map(jax.block_until_ready, pack_params(params))

    out = decoder_layer_forward(x, memory, src_mask, tgt_mask, packed)
    out = jax.block_until_ready(out)

    ref = decoder_layer_reference(x, memory, src_mask, tgt_mask, params)
    assert out.shape == (B, T, D_MODEL)
    err = float(jnp.max(jnp.abs(out - ref)))
    assert jnp.allclose(out, ref, atol=5e-2, rtol=5e-2), f"kernel mismatch, max abs err={err}"
    print("KERNEL_OK")
</pallas_src>

<mosaic_0001>
module attributes {stable_mosaic.version = 11 : i64} {
  func.func @decoder_layer_kernel(%arg0: memref<16x32xf32, #tpu.memory_space<vmem>>, %arg1: memref<32x32xf32, #tpu.memory_space<vmem>>, %arg2: memref<16x16xf32, #tpu.memory_space<vmem>>, %arg3: memref<16x32xf32, #tpu.memory_space<vmem>>, %arg4: memref<6x32x128xf32, #tpu.memory_space<vmem>>, %arg5: memref<128x32xf32, #tpu.memory_space<vmem>>, %arg6: memref<16x128xf32, #tpu.memory_space<vmem>>, %arg7: memref<16x32xf32, #tpu.memory_space<vmem>>) attributes {dimension_semantics = [], scalar_prefetch = 0 : i64, scratch_operands = 0 : i64, tpu.core_type = #tpu.core_type<tc>} {
    %c0 = arith.constant 0 : index
    %c0_0 = arith.constant 0 : index
    %0 = vector.load %arg0[%c0, %c0_0] : memref<16x32xf32, #tpu.memory_space<vmem>>, vector<16x32xf32>
    %c0_1 = arith.constant 0 : index
    %c0_2 = arith.constant 0 : index
    %1 = vector.load %arg1[%c0_1, %c0_2] : memref<32x32xf32, #tpu.memory_space<vmem>>, vector<32x32xf32>
    %c0_3 = arith.constant 0 : index
    %c0_4 = arith.constant 0 : index
    %2 = vector.load %arg2[%c0_3, %c0_4] : memref<16x16xf32, #tpu.memory_space<vmem>>, vector<16x16xf32>
    %c0_5 = arith.constant 0 : index
    %c0_6 = arith.constant 0 : index
    %3 = vector.load %arg3[%c0_5, %c0_6] : memref<16x32xf32, #tpu.memory_space<vmem>>, vector<16x32xf32>
    %c0_7 = arith.constant 0 : index
    %c0_8 = arith.constant 0 : index
    %4 = vector.load %arg6[%c0_7, %c0_8] : memref<16x128xf32, #tpu.memory_space<vmem>>, vector<16x128xf32>
    %5 = vector.extract_strided_slice %4 {offsets = [7, 0], sizes = [1, 32], strides = [1, 1]} : vector<16x128xf32> to vector<1x32xf32>
    %6 = vector.extract_strided_slice %4 {offsets = [10, 0], sizes = [1, 32], strides = [1, 1]} : vector<16x128xf32> to vector<1x32xf32>
    %cst = arith.constant dense<0.000000e+00> : vector<16xf32>
    %7 = vector.multi_reduction <add>, %0, %cst [1] : vector<16x32xf32> to vector<16xf32>
    %8 = vector.shape_cast %7 : vector<16xf32> to vector<16x1xf32>
    %cst_9 = arith.constant 3.200000e+01 : f32
    %9 = vector.broadcast %cst_9 : f32 to vector<16x1xf32>
    %10 = arith.divf %8, %9 : vector<16x1xf32>
    %11 = vector.broadcast %10 : vector<16x1xf32> to vector<16x32xf32>
    %12 = arith.subf %0, %11 : vector<16x32xf32>
    %13 = arith.mulf %12, %12 : vector<16x32xf32>
    %cst_10 = arith.constant dense<0.000000e+00> : vector<16xf32>
    %14 = vector.multi_reduction <add>, %13, %cst_10 [1] : vector<16x32xf32> to vector<16xf32>
    %15 = vector.shape_cast %14 : vector<16xf32> to vector<16x1xf32>
    %cst_11 = arith.constant 3.100000e+01 : f32
    %16 = vector.broadcast %cst_11 : f32 to vector<16x1xf32>
    %17 = arith.divf %15, %16 : vector<16x1xf32>
    %18 = math.sqrt %17 : vector<16x1xf32>
    %cst_12 = arith.constant 9.99999997E-7 : f32
    %19 = vector.broadcast %cst_12 : f32 to vector<16x1xf32>
    %20 = arith.addf %18, %19 : vector<16x1xf32>
    %21 = tpu.reciprocal %20 {approx = true} : vector<16x1xf32> -> vector<16x1xf32>
    %22 = vector.broadcast %10 : vector<16x1xf32> to vector<16x32xf32>
    %23 = arith.subf %0, %22 : vector<16x32xf32>
    %24 = vector.broadcast %5 : vector<1x32xf32> to vector<16x32xf32>
    %25 = arith.mulf %24, %23 : vector<16x32xf32>
    %26 = vector.broadcast %21 : vector<16x1xf32> to vector<16x32xf32>
    %27 = arith.mulf %25, %26 : vector<16x32xf32>
    %28 = vector.broadcast %6 : vector<1x32xf32> to vector<16x32xf32>
    %29 = arith.addf %27, %28 : vector<16x32xf32>
    %c0_13 = arith.constant 0 : index
    %c0_14 = arith.constant 0 : index
    %c0_15 = arith.constant 0 : index
    %30 = vector.load %arg4[%c0_13, %c0_14, %c0_15] : memref<6x32x128xf32, #tpu.memory_space<vmem>>, vector<1x32x128xf32>
    %31 = vector.shape_cast %30 : vector<1x32x128xf32> to vector<32x128xf32>
    %32 = vector.extract_strided_slice %31 {offsets = [0, 0], sizes = [32, 96], strides = [1, 1]} : vector<32x128xf32> to vector<32x96xf32>
    %cst_16 = arith.constant dense<0.000000e+00> : vector<16x96xf32>
    %33 = tpu.matmul %29, %32, %cst_16 {dimension_numbers = #tpu.dot_dimension_numbers<[1], [0], [0], [1], [0, 0, 1, 1], [], []>} : vector<16x32xf32>, vector<32x96xf32>, vector<16x96xf32> -> vector<16x96xf32>
    %34 = vector.extract_strided_slice %4 {offsets = [0, 0], sizes = [1, 96], strides = [1, 1]} : vector<16x128xf32> to vector<1x96xf32>
    %35 = vector.broadcast %34 : vector<1x96xf32> to vector<16x96xf32>
    %36 = arith.addf %33, %35 : vector<16x96xf32>
    %37 = vector.shape_cast %36 : vector<16x96xf32> to vector<16x12x8xf32>
    %38 = tpu.transpose %37, [1, 0, 2] : vector<16x12x8xf32> -> vector<12x16x8xf32>
    %39 = vector.extract_strided_slice %38 {offsets = [0, 0, 0], sizes = [4, 16, 8], strides = [1, 1, 1]} : vector<12x16x8xf32> to vector<4x16x8xf32>
    %40 = vector.extract_strided_slice %38 {offsets = [4, 0, 0], sizes = [4, 16, 8], strides = [1, 1, 1]} : vector<12x16x8xf32> to vector<4x16x8xf32>
    %41 = vector.extract_strided_slice %38 {offsets = [8, 0, 0], sizes = [4, 16, 8], strides = [1, 1, 1]} : vector<12x16x8xf32> to vector<4x16x8xf32>
    "tpu.trace_start"() <{level = 10 : i32, message = "hqd,hkd->hqk"}> : () -> ()
    %cst_17 = arith.constant dense<0.000000e+00> : vector<4x16x16xf32>
    %42 = tpu.matmul %39, %40, %cst_17 {dimension_numbers = #tpu.dot_dimension_numbers<[2], [2], [1], [1], [0, 0, 0, 1, 1, 1], [0], [0]>} : vector<4x16x8xf32>, vector<4x16x8xf32>, vector<4x16x16xf32> -> vector<4x16x16xf32>
    "tpu.trace_stop"() : () -> ()
    %43 = vector.shape_cast %2 : vector<16x16xf32> to vector<1x16x16xf32>
    %44 = vector.broadcast %43 : vector<1x16x16xf32> to vector<4x16x16xf32>
    %45 = arith.addf %42, %44 : vector<4x16x16xf32>
    %cst_18 = arith.constant dense<0xFF800000> : vector<4x16xf32>
    %46 = vector.multi_reduction <maximumf>, %45, %cst_18 [2] : vector<4x16x16xf32> to vector<4x16xf32>
    %47 = vector.shape_cast %46 : vector<4x16xf32> to vector<4x16x1xf32>
    %48 = vector.broadcast %47 : vector<4x16x1xf32> to vector<4x16x16xf32>
    %49 = arith.subf %45, %48 : vector<4x16x16xf32>
    %50 = math.exp %49 : vector<4x16x16xf32>
    %cst_19 = arith.constant dense<0.000000e+00> : vector<4x16xf32>
    %51 = vector.multi_reduction <add>, %50, %cst_19 [2] : vector<4x16x16xf32> to vector<4x16xf32>
    %52 = vector.shape_cast %51 : vector<4x16xf32> to vector<4x16x1xf32>
    %53 = tpu.reciprocal %52 {approx = true} : vector<4x16x1xf32> -> vector<4x16x1xf32>
    %54 = vector.broadcast %53 : vector<4x16x1xf32> to vector<4x16x16xf32>
    %55 = arith.mulf %50, %54 : vector<4x16x16xf32>
    "tpu.trace_start"() <{level = 10 : i32, message = "hqk,hkd->hqd"}> : () -> ()
    %cst_20 = arith.constant dense<0.000000e+00> : vector<4x16x8xf32>
    %56 = tpu.matmul %55, %41, %cst_20 {dimension_numbers = #tpu.dot_dimension_numbers<[2], [1], [1], [2], [0, 0, 0, 1, 1, 2], [0], [0]>} : vector<4x16x16xf32>, vector<4x16x8xf32>, vector<4x16x8xf32> -> vector<4x16x8xf32>
    "tpu.trace_stop"() : () -> ()
    %57 = tpu.transpose %56, [1, 0, 2] : vector<4x16x8xf32> -> vector<16x4x8xf32>
    %58 = vector.shape_cast %57 : vector<16x4x8xf32> to vector<16x32xf32>
    %c1 = arith.constant 1 : index
    %c0_21 = arith.constant 0 : index
    %c0_22 = arith.constant 0 : index
    %59 = vector.load %arg4[%c1, %c0_21, %c0_22] : memref<6x32x128xf32, #tpu.memory_space<vmem>>, vector<1x32x128xf32>
    %60 = vector.shape_cast %59 : vector<1x32x128xf32> to vector<32x128xf32>
    %61 = vector.extract_strided_slice %60 {offsets = [0, 0], sizes = [32, 32], strides = [1, 1]} : vector<32x128xf32> to vector<32x32xf32>
    %cst_23 = arith.constant dense<0.000000e+00> : vector<16x32xf32>
    %62 = tpu.matmul %58, %61, %cst_23 {dimension_numbers = #tpu.dot_dimension_numbers<[1], [0], [0], [1], [0, 0, 1, 1], [], []>} : vector<16x32xf32>, vector<32x32xf32>, vector<16x32xf32> -> vector<16x32xf32>
    %63 = vector.extract_strided_slice %4 {offsets = [1, 0], sizes = [1, 32], strides = [1, 1]} : vector<16x128xf32> to vector<1x32xf32>
    %64 = vector.broadcast %63 : vector<1x32xf32> to vector<16x32xf32>
    %65 = arith.addf %62, %64 : vector<16x32xf32>
    %66 = arith.addf %0, %65 : vector<16x32xf32>
    %67 = vector.extract_strided_slice %4 {offsets = [8, 0], sizes = [1, 32], strides = [1, 1]} : vector<16x128xf32> to vector<1x32xf32>
    %68 = vector.extract_strided_slice %4 {offsets = [11, 0], sizes = [1, 32], strides = [1, 1]} : vector<16x128xf32> to vector<1x32xf32>
    %cst_24 = arith.constant dense<0.000000e+00> : vector<16xf32>
    %69 = vector.multi_reduction <add>, %66, %cst_24 [1] : vector<16x32xf32> to vector<16xf32>
    %70 = vector.shape_cast %69 : vector<16xf32> to vector<16x1xf32>
    %cst_25 = arith.constant 3.200000e+01 : f32
    %71 = vector.broadcast %cst_25 : f32 to vector<16x1xf32>
    %72 = arith.divf %70, %71 : vector<16x1xf32>
    %73 = vector.broadcast %72 : vector<16x1xf32> to vector<16x32xf32>
    %74 = arith.subf %66, %73 : vector<16x32xf32>
    %75 = arith.mulf %74, %74 : vector<16x32xf32>
    %cst_26 = arith.constant dense<0.000000e+00> : vector<16xf32>
    %76 = vector.multi_reduction <add>, %75, %cst_26 [1] : vector<16x32xf32> to vector<16xf32>
    %77 = vector.shape_cast %76 : vector<16xf32> to vector<16x1xf32>
    %cst_27 = arith.constant 3.100000e+01 : f32
    %78 = vector.broadcast %cst_27 : f32 to vector<16x1xf32>
    %79 = arith.divf %77, %78 : vector<16x1xf32>
    %80 = math.sqrt %79 : vector<16x1xf32>
    %cst_28 = arith.constant 9.99999997E-7 : f32
    %81 = vector.broadcast %cst_28 : f32 to vector<16x1xf32>
    %82 = arith.addf %80, %81 : vector<16x1xf32>
    %83 = tpu.reciprocal %82 {approx = true} : vector<16x1xf32> -> vector<16x1xf32>
    %84 = vector.broadcast %72 : vector<16x1xf32> to vector<16x32xf32>
    %85 = arith.subf %66, %84 : vector<16x32xf32>
    %86 = vector.broadcast %67 : vector<1x32xf32> to vector<16x32xf32>
    %87 = arith.mulf %86, %85 : vector<16x32xf32>
    %88 = vector.broadcast %83 : vector<16x1xf32> to vector<16x32xf32>
    %89 = arith.mulf %87, %88 : vector<16x32xf32>
    %90 = vector.broadcast %68 : vector<1x32xf32> to vector<16x32xf32>
    %91 = arith.addf %89, %90 : vector<16x32xf32>
    %c2 = arith.constant 2 : index
    %c0_29 = arith.constant 0 : index
    %c0_30 = arith.constant 0 : index
    %92 = vector.load %arg4[%c2, %c0_29, %c0_30] : memref<6x32x128xf32, #tpu.memory_space<vmem>>, vector<1x32x128xf32>
    %93 = vector.shape_cast %92 : vector<1x32x128xf32> to vector<32x128xf32>
    %94 = vector.extract_strided_slice %93 {offsets = [0, 0], sizes = [32, 32], strides = [1, 1]} : vector<32x128xf32> to vector<32x32xf32>
    %cst_31 = arith.constant dense<0.000000e+00> : vector<16x32xf32>
    %95 = tpu.matmul %91, %94, %cst_31 {dimension_numbers = #tpu.dot_dimension_numbers<[1], [0], [0], [1], [0, 0, 1, 1], [], []>} : vector<16x32xf32>, vector<32x32xf32>, vector<16x32xf32> -> vector<16x32xf32>
    %96 = vector.extract_strided_slice %4 {offsets = [2, 0], sizes = [1, 32], strides = [1, 1]} : vector<16x128xf32> to vector<1x32xf32>
    %97 = vector.broadcast %96 : vector<1x32xf32> to vector<16x32xf32>
    %98 = arith.addf %95, %97 : vector<16x32xf32>
    %c3 = arith.constant 3 : index
    %c0_32 = arith.constant 0 : index
    %c0_33 = arith.constant 0 : index
    %99 = vector.load %arg4[%c3, %c0_32, %c0_33] : memref<6x32x128xf32, #tpu.memory_space<vmem>>, vector<1x32x128xf32>
    %100 = vector.shape_cast %99 : vector<1x32x128xf32> to vector<32x128xf32>
    %101 = vector.extract_strided_slice %100 {offsets = [0, 0], sizes = [32, 64], strides = [1, 1]} : vector<32x128xf32> to vector<32x64xf32>
    %cst_34 = arith.constant dense<0.000000e+00> : vector<32x64xf32>
    %102 = tpu.matmul %1, %101, %cst_34 {dimension_numbers = #tpu.dot_dimension_numbers<[1], [0], [0], [1], [0, 0, 1, 1], [], []>} : vector<32x32xf32>, vector<32x64xf32>, vector<32x64xf32> -> vector<32x64xf32>
    %103 = vector.extract_strided_slice %4 {offsets = [3, 0], sizes = [1, 64], strides = [1, 1]} : vector<16x128xf32> to vector<1x64xf32>
    %104 = vector.broadcast %103 : vector<1x64xf32> to vector<32x64xf32>
    %105 = arith.addf %102, %104 : vector<32x64xf32>
    %106 = vector.shape_cast %98 : vector<16x32xf32> to vector<16x4x8xf32>
    %107 = tpu.transpose %106, [1, 0, 2] : vector<16x4x8xf32> -> vector<4x16x8xf32>
    %108 = vector.shape_cast %105 : vector<32x64xf32> to vector<32x8x8xf32>
    %109 = tpu.transpose %108, [1, 0, 2] : vector<32x8x8xf32> -> vector<8x32x8xf32>
    %110 = vector.extract_strided_slice %109 {offsets = [0, 0, 0], sizes = [4, 32, 8], strides = [1, 1, 1]} : vector<8x32x8xf32> to vector<4x32x8xf32>
    %111 = vector.extract_strided_slice %109 {offsets = [4, 0, 0], sizes = [4, 32, 8], strides = [1, 1, 1]} : vector<8x32x8xf32> to vector<4x32x8xf32>
    "tpu.trace_start"() <{level = 10 : i32, message = "hqd,hkd->hqk"}> : () -> ()
    %cst_35 = arith.constant dense<0.000000e+00> : vector<4x16x32xf32>
    %112 = tpu.matmul %107, %110, %cst_35 {dimension_numbers = #tpu.dot_dimension_numbers<[2], [2], [1], [1], [0, 0, 0, 1, 1, 1], [0], [0]>} : vector<4x16x8xf32>, vector<4x32x8xf32>, vector<4x16x32xf32> -> vector<4x16x32xf32>
    "tpu.trace_stop"() : () -> ()
    %113 = vector.shape_cast %3 : vector<16x32xf32> to vector<1x16x32xf32>
    %114 = vector.broadcast %113 : vector<1x16x32xf32> to vector<4x16x32xf32>
    %115 = arith.addf %112, %114 : vector<4x16x32xf32>
    %cst_36 = arith.constant dense<0xFF800000> : vector<4x16xf32>
    %116 = vector.multi_reduction <maximumf>, %115, %cst_36 [2] : vector<4x16x32xf32> to vector<4x16xf32>
    %117 = vector.shape_cast %116 : vector<4x16xf32> to vector<4x16x1xf32>
    %118 = vector.broadcast %117 : vector<4x16x1xf32> to vector<4x16x32xf32>
    %119 = arith.subf %115, %118 : vector<4x16x32xf32>
    %120 = math.exp %119 : vector<4x16x32xf32>
    %cst_37 = arith.constant dense<0.000000e+00> : vector<4x16xf32>
    %121 = vector.multi_reduction <add>, %120, %cst_37 [2] : vector<4x16x32xf32> to vector<4x16xf32>
    %122 = vector.shape_cast %121 : vector<4x16xf32> to vector<4x16x1xf32>
    %123 = tpu.reciprocal %122 {approx = true} : vector<4x16x1xf32> -> vector<4x16x1xf32>
    %124 = vector.broadcast %123 : vector<4x16x1xf32> to vector<4x16x32xf32>
    %125 = arith.mulf %120, %124 : vector<4x16x32xf32>
    "tpu.trace_start"() <{level = 10 : i32, message = "hqk,hkd->hqd"}> : () -> ()
    %cst_38 = arith.constant dense<0.000000e+00> : vector<4x16x8xf32>
    %126 = tpu.matmul %125, %111, %cst_38 {dimension_numbers = #tpu.dot_dimension_numbers<[2], [1], [1], [2], [0, 0, 0, 1, 1, 2], [0], [0]>} : vector<4x16x32xf32>, vector<4x32x8xf32>, vector<4x16x8xf32> -> vector<4x16x8xf32>
    "tpu.trace_stop"() : () -> ()
    %127 = tpu.transpose %126, [1, 0, 2] : vector<4x16x8xf32> -> vector<16x4x8xf32>
    %128 = vector.shape_cast %127 : vector<16x4x8xf32> to vector<16x32xf32>
    %c4 = arith.constant 4 : index
    %c0_39 = arith.constant 0 : index
    %c0_40 = arith.constant 0 : index
    %129 = vector.load %arg4[%c4, %c0_39, %c0_40] : memref<6x32x128xf32, #tpu.memory_space<vmem>>, vector<1x32x128xf32>
    %130 = vector.shape_cast %129 : vector<1x32x128xf32> to vector<32x128xf32>
    %131 = vector.extract_strided_slice %130 {offsets = [0, 0], sizes = [32, 32], strides = [1, 1]} : vector<32x128xf32> to vector<32x32xf32>
    %cst_41 = arith.constant dense<0.000000e+00> : vector<16x32xf32>
    %132 = tpu.matmul %128, %131, %cst_41 {dimension_numbers = #tpu.dot_dimension_numbers<[1], [0], [0], [1], [0, 0, 1, 1], [], []>} : vector<16x32xf32>, vector<32x32xf32>, vector<16x32xf32> -> vector<16x32xf32>
    %133 = vector.extract_strided_slice %4 {offsets = [4, 0], sizes = [1, 32], strides = [1, 1]} : vector<16x128xf32> to vector<1x32xf32>
    %134 = vector.broadcast %133 : vector<1x32xf32> to vector<16x32xf32>
    %135 = arith.addf %132, %134 : vector<16x32xf32>
    %136 = arith.addf %66, %135 : vector<16x32xf32>
    %137 = vector.extract_strided_slice %4 {offsets = [9, 0], sizes = [1, 32], strides = [1, 1]} : vector<16x128xf32> to vector<1x32xf32>
    %138 = vector.extract_strided_slice %4 {offsets = [12, 0], sizes = [1, 32], strides = [1, 1]} : vector<16x128xf32> to vector<1x32xf32>
    %cst_42 = arith.constant dense<0.000000e+00> : vector<16xf32>
    %139 = vector.multi_reduction <add>, %136, %cst_42 [1] : vector<16x32xf32> to vector<16xf32>
    %140 = vector.shape_cast %139 : vector<16xf32> to vector<16x1xf32>
    %cst_43 = arith.constant 3.200000e+01 : f32
    %141 = vector.broadcast %cst_43 : f32 to vector<16x1xf32>
    %142 = arith.divf %140, %141 : vector<16x1xf32>
    %143 = vector.broadcast %142 : vector<16x1xf32> to vector<16x32xf32>
    %144 = arith.subf %136, %143 : vector<16x32xf32>
    %145 = arith.mulf %144, %144 : vector<16x32xf32>
    %cst_44 = arith.constant dense<0.000000e+00> : vector<16xf32>
    %146 = vector.multi_reduction <add>, %145, %cst_44 [1] : vector<16x32xf32> to vector<16xf32>
    %147 = vector.shape_cast %146 : vector<16xf32> to vector<16x1xf32>
    %cst_45 = arith.constant 3.100000e+01 : f32
    %148 = vector.broadcast %cst_45 : f32 to vector<16x1xf32>
    %149 = arith.divf %147, %148 : vector<16x1xf32>
    %150 = math.sqrt %149 : vector<16x1xf32>
    %cst_46 = arith.constant 9.99999997E-7 : f32
    %151 = vector.broadcast %cst_46 : f32 to vector<16x1xf32>
    %152 = arith.addf %150, %151 : vector<16x1xf32>
    %153 = tpu.reciprocal %152 {approx = true} : vector<16x1xf32> -> vector<16x1xf32>
    %154 = vector.broadcast %142 : vector<16x1xf32> to vector<16x32xf32>
    %155 = arith.subf %136, %154 : vector<16x32xf32>
    %156 = vector.broadcast %137 : vector<1x32xf32> to vector<16x32xf32>
    %157 = arith.mulf %156, %155 : vector<16x32xf32>
    %158 = vector.broadcast %153 : vector<16x1xf32> to vector<16x32xf32>
    %159 = arith.mulf %157, %158 : vector<16x32xf32>
    %160 = vector.broadcast %138 : vector<1x32xf32> to vector<16x32xf32>
    %161 = arith.addf %159, %160 : vector<16x32xf32>
    %c5 = arith.constant 5 : index
    %c0_47 = arith.constant 0 : index
    %c0_48 = arith.constant 0 : index
    %162 = vector.load %arg4[%c5, %c0_47, %c0_48] : memref<6x32x128xf32, #tpu.memory_space<vmem>>, vector<1x32x128xf32>
    %163 = vector.shape_cast %162 : vector<1x32x128xf32> to vector<32x128xf32>
    %cst_49 = arith.constant dense<0.000000e+00> : vector<16x128xf32>
    %164 = tpu.matmul %161, %163, %cst_49 {dimension_numbers = #tpu.dot_dimension_numbers<[1], [0], [0], [1], [0, 0, 1, 1], [], []>} : vector<16x32xf32>, vector<32x128xf32>, vector<16x128xf32> -> vector<16x128xf32>
    %165 = vector.extract_strided_slice %4 {offsets = [5, 0], sizes = [1, 128], strides = [1, 1]} : vector<16x128xf32> to vector<1x128xf32>
    %166 = vector.broadcast %165 : vector<1x128xf32> to vector<16x128xf32>
    %167 = arith.addf %164, %166 : vector<16x128xf32>
    %cst_50 = arith.constant 0.000000e+00 : f32
    %168 = vector.broadcast %cst_50 : f32 to vector<16x128xf32>
    %169 = arith.maximumf %167, %168 : vector<16x128xf32>
    %c0_51 = arith.constant 0 : index
    %c0_52 = arith.constant 0 : index
    %170 = vector.load %arg5[%c0_51, %c0_52] : memref<128x32xf32, #tpu.memory_space<vmem>>, vector<128x32xf32>
    %cst_53 = arith.constant dense<0.000000e+00> : vector<16x32xf32>
    %171 = tpu.matmul %169, %170, %cst_53 {dimension_numbers = #tpu.dot_dimension_numbers<[1], [0], [0], [1], [0, 0, 1, 1], [], []>} : vector<16x128xf32>, vector<128x32xf32>, vector<16x32xf32> -> vector<16x32xf32>
    %172 = vector.extract_strided_slice %4 {offsets = [6, 0], sizes = [1, 32], strides = [1, 1]} : vector<16x128xf32> to vector<1x32xf32>
    %173 = vector.broadcast %172 : vector<1x32xf32> to vector<16x32xf32>
    %174 = arith.addf %171, %173 : vector<16x32xf32>
    %175 = arith.addf %136, %174 : vector<16x32xf32>
    %c0_54 = arith.constant 0 : index
    %c0_55 = arith.constant 0 : index
    %176 = vector.load %arg7[%c0_54, %c0_55] : memref<16x32xf32, #tpu.memory_space<vmem>>, vector<16x32xf32>
    tpu.vector_store %arg7[%c0_54, %c0_55], %175 {strides = array<i32>} : memref<16x32xf32, #tpu.memory_space<vmem>>, vector<16x32xf32>,
    return
  }
}

</mosaic_0001>

<bundles_post_ra>
// kernel: decoder_layer_forward.1
= control target key start
LH: loop header
LB: loop body
LE: loop exit
PB: predicated region body
PF: predicated region fallthrough
CT: control target
= control target key end

     0   :  { %vm39_vm0 = vcmask 261120   ;;  %s7354_s0 = inlined_call_operand.vmem [shape: f32[16,32], index: 0, kind: input, shape index: {}]   ;;  %s7355_s1 = inlined_call_operand.vmem [shape: f32[32,32], index: 1, kind: input, shape index: {}]   ;;  %s7356_s2 = inlined_call_operand.vmem [shape: f32[16,16], index: 2, kind: input, shape index: {}]   ;;  %s7357_s3 = inlined_call_operand.vmem [shape: f32[16,32], index: 3, kind: input, shape index: {}]   ;;  %s7358_s4 = inlined_call_operand.vmem [shape: f32[6,32,128], index: 4, kind: input, shape index: {}]   ;;  %s7359_s5 = inlined_call_operand.vmem [shape: f32[128,32], index: 5, kind: input, shape index: {}]   ;;  %s7360_s6 = inlined_call_operand.vmem [shape: f32[16,128], index: 6, kind: input, shape index: {}]   ;;  %s7361_s7 = inlined_call_operand.hbm [shape: f32[16,32], index: 7, kind: output, shape index: {}]  }
   0x1   :  { %v27_v0 = vld [vmem:[%s7354_s0] sm:$0xff]  ;;  %v28_v1 = vld [vmem:[%s7354_s0 + $0x8] sm:$0xff] }
   0x2   :  { %12 = vsyncpa [#allocation3], 0  ;;  %v40_v2 = vsel %vm39_vm0, %v27_v0, 0.0  ;;  %v43_v3 = vsel %vm39_vm0, %v28_v1, 0.0  ;;  %v94_v14 = vld [vmem:[%s7358_s4] sm:$0xff]  ;;  %v95_v15 = vld [vmem:[%s7358_s4 + $0x8] sm:$0xff]  ;;  %v80_v25 = vlaneseq }
   0x3   :  { %41 = vadd.xlane.f32.xlu0 %v40_v2  ;;  %v96_v16 = vld [vmem:[%s7358_s4 + $0x10] sm:$0xff]  ;;  %v5915_v17 = vpack.c.bf16 %v95_v15, %v94_v14  ;;  %v97_v18 = vld [vmem:[%s7358_s4 + $0x18] sm:$0xff]  ;;  %v37_v38 = vld [vmem:[%s7360_s6] sm:$0xff]  ;;  %s6251_s17 = smov 96   ;;  %s6252_s18 = smov 88   ;;  %vm1067_vm5 = vcmask 64512  }
   0x4   :  { %v5919_v19 = vpack.c.bf16 %v97_v18, %v96_v16  ;;  %v6331_v30 = vshrl.u32 %v80_v25, 7  ;;  %v38_v42 = vld [vmem:[%s7360_s6 + $0x8] sm:$0xff]  ;;  %s6253_s19 = smov 80   ;;  %s6254_s20 = smov 72   ;;  %v6258_v60 = vmov 1983009808   ;;  %vm6462_vm6 = vmpackc.low %vm1067_vm5, %vm1067_vm5 }
   0x5   :  { %5916 = vmatprep.subr.bf16.mxu0 %v5915_v17  ;;  %s6255_s21 = smov 120   ;;  %s6256_s22 = smov 104   ;;  %v254_v61 = vunpack.c.l.s4 %v6258_v60  ;;  %vm1416_vm7 = vcmask 130048   ;;  %vm2129_vm8 = vcmask 195584  }
   0x6   :  { %5918 = vmatpush3.bf16.msra.mxu0 %v5915_v17  ;;  %v82_v36 = vsub.s32 7, %v6331_v30  ;;  %v90_v41 = vsub.s32 2, %v6331_v30  ;;  %v100_v52 = vsub.s32 0, %v6331_v30  ;;  %s6257_s23 = smov 112   ;;  %s6261_s28 = smov 56  }
   0x7   :  { %44 = vadd.xlane.f32.xlu0 %v43_v3  ;;  %5920 = vmatprep.subr.bf16.mxu0 %v5919_v19  ;;  %v255_v2 = vunpack.c.0.s8 %v254_v61  ;;  %s6262_s29 = smov 48   ;;  %s6263_s30 = smov 40  }
   0x8   :  { %v83_v40 = vrot.slane %v37_v38, %v82_v36  ;;  %v91_v44 = vrot.slane %v38_v42, %v90_v41  ;;  %v101_v53 = vrot.slane %v37_v38, %v100_v52  ;;  %s6264_s16 = smov 8   ;;  %s6265_s24 = smov 16  }
   0x9   :  { %s6266_s25 = smov 24  }
   0xa   :  { %5922 = vmatpush3.bf16.msra.mxu0 %v5919_v19 }
  0x90   :  { %v42_v4 = vpop.xlane.xlu0 %41 }
  0x91   :  { %v47_v5 = vmul.f32 0.03125, %v42_v4 }
  0x93   :  { %v49_v6 = vsub.f32 %v27_v0, %v47_v5  ;;  %v6259_v0 = vmov 1934713408  }
  0x94   :  { %v45_v7 = vpop.xlane.xlu0 %44 }
  0x95   :  { %v48_v8 = vmul.f32 0.03125, %v45_v7  ;;  %v51_v9 = vmul.f32 %v49_v6, %v49_v6  ;;  %v84_v43 = vmul.f32 %v83_v40, %v49_v6 }
  0x97   :  { %v50_v10 = vsub.f32 %v28_v1, %v48_v8  ;;  %v53_v11 = vsel %vm39_vm0, %v51_v9, 0.0  ;;  %v318_v1 = vunpack.c.l.s4 %v6259_v0  ;;  %v6381_v8 = vsub.s32 %v255_v2, %v6331_v30 }
  0x98   :  { %54 = vadd.xlane.f32.xlu1 %v53_v11 }
  0x99   :  { %v52_v12 = vmul.f32 %v50_v10, %v50_v10  ;;  %v85_v47 = vmul.f32 %v83_v40, %v50_v10  ;;  %v319_v5 = vunpack.c.0.s8 %v318_v1 }
  0x9b   :  { %v56_v13 = vsel %vm39_vm0, %v52_v12, 0.0  ;;  %v6384_v15 = vsub.s32 %v319_v5, %v6331_v30 }
  0x9c   :  { %57 = vadd.xlane.f32.xlu1 %v56_v13 }
 0x125   :  { %v55_v20 = vpop.xlane.xlu1 %54 }
 0x126   :  { %v60_v21 = vmul.f32 0.032258064, %v55_v20 }
 0x128   :  { %6133 = vrsqrt.f32 %v60_v21  ;;  %vm64_vm1 = vcmp.eq.f32.partialorder %v60_v21, inf  ;;  %v67_v27 = vand.u32 2147483648, %v60_v21  ;;  %vm66_vm2 = vcmp.eq.f32.partialorder %v60_v21, 0.0 }
 0x129   :  { %v58_v22 = vpop.xlane.xlu1 %57 }
 0x12a   :  { %v61_v23 = vmul.f32 0.032258064, %v58_v22 }
 0x12c   :  { %6135 = vrsqrt.f32 %v61_v23  ;;  %vm71_vm3 = vcmp.eq.f32.partialorder %v61_v23, inf  ;;  %v74_v34 = vand.u32 2147483648, %v61_v23  ;;  %vm73_vm4 = vcmp.eq.f32.partialorder %v61_v23, 0.0 }
 0x132   :  { %v6134_v24 = vpop.eup %6133 }
 0x133   :  { %v63_v26 = vmul.f32 %v6134_v24, %v60_v21 }
 0x135   :  { %v65_v28 = vsel %vm64_vm1, %v60_v21, %v63_v26 }
 0x136   :  { %v6136_v29 = vpop.eup %6135  ;;  %v68_v31 = vsel %vm66_vm2, %v67_v27, %v65_v28 }
 0x137   :  { %v70_v32 = vmul.f32 %v6136_v29, %v61_v23  ;;  %v76_v33 = vadd.f32 1e-06, %v68_v31 }
 0x139   :  { %v72_v35 = vsel %vm71_vm3, %v61_v23, %v70_v32  ;;  %6137 = vrcp.f32 %v76_v33 }
 0x13a   :  { %v75_v37 = vsel %vm73_vm4, %v74_v34, %v72_v35 }
 0x13b   :  { %v77_v39 = vadd.f32 1e-06, %v75_v37 }
 0x13d   :  { %6139 = vrcp.f32 %v77_v39 }
 0x143   :  { %v6138_v45 = vpop.eup %6137 }
 0x144   :  { %v86_v46 = vmul.f32 %v6138_v45, %v84_v43 }
 0x146   :  { %v92_v48 = vadd.f32 %v91_v44, %v86_v46 }
 0x147   :  { %v6140_v49 = vpop.eup %6139 }
 0x148   :  { %v87_v50 = vmul.f32 %v6140_v49, %v85_v47  ;;  %5675 = vmatprep.mubr.msk.f32.mxu0 %vm39_vm0, %v92_v48 }
 0x14a   :  { %v93_v51 = vadd.f32 %v91_v44, %v87_v50 }
 0x14c   :  { %5676 = vmatmul.mubr.msk.f32.vlgmr.msra.gmra.mrb[0].mxu0 %vm39_vm0, %v93_v51 }
 0x21f   :  { %v5677_v54 = vpop.f32.mrb[0].mxu0 }
 0x220   :  { %v6348_v55 = vadd.f32 %v5677_v54, %v101_v53  ;;  %v174_v56 = vpop.f32.mrb[1].mxu0 }
 0x221   :  { %v6350_v57 = vadd.f32 %v174_v56, %v101_v53 }
 0x222   :  { %205 = vrot.lane.b32.xlu1 %v6348_v55, %s6251_s17 }
 0x223   :  { %203 = vrot.lane.b32.xlu0 %v6350_v57, %s6251_s17 }
 0x226   :  { %211 = vrot.lane.b32.xlu1 %v6348_v55, %s6252_s18 }
 0x227   :  { %215 = vrot.lane.b32.xlu0 %v6350_v57, %s6253_s19 }
 0x22a   :  { %217 = vrot.lane.b32.xlu1 %v6348_v55, %s6253_s19 }
 0x22b   :  { %221 = vrot.lane.b32.xlu0 %v6350_v57, %s6254_s20 }
 0x22e   :  { %223 = vrot.lane.b32.xlu1 %v6348_v55, %s6254_s20 }
 0x22f   :  { %185 = vrot.lane.b32.xlu0 %v6350_v57, %s6255_s21 }
 0x232   :  { %209 = vrot.lane.b32.xlu1 %v6350_v57, %s6252_s18 }
 0x233   :  { %197 = vrot.lane.b32.xlu0 %v6350_v57, %s6256_s22 }
 0x236   :  { %187 = vrot.lane.b32.xlu1 %v6348_v55, %s6255_s21 }
 0x237   :  { %193 = vrot.lane.b32.xlu0 %v6348_v55, %s6257_s23 }
 0x23a   :  { %191 = vrot.lane.b32.xlu1 %v6350_v57, %s6257_s23 }
 0x23e   :  { %199 = vrot.lane.b32.xlu1 %v6348_v55, %s6256_s22 }
 0x294   :  { %v206_v58 = vpop.permute.xlu1 %205 }
 0x295   :  { %v204_v59 = vpop.permute.xlu0 %203 }
 0x298   :  { %v212_v62 = vpop.permute.xlu1 %211 }
 0x299   :  { %v216_v63 = vpop.permute.xlu0 %215 }
 0x29a   :  { %v283_v9 = vcombine.low %v204_v59, %v216_v63  ;;  %v284_v10 = vcombine.high %v204_v59, %v216_v63 }
 0x29c   :  { %v218_v3 = vpop.permute.xlu1 %217  ;;  %v291_v20 = vrot.slane %v283_v9, %v6381_v8  ;;  %v298_v21 = vrot.slane %v284_v10, %v6381_v8 }
 0x29d   :  { %v222_v4 = vpop.permute.xlu0 %221  ;;  %v487_v6 = vcombine.low %v206_v58, %v218_v3  ;;  %v488_v7 = vcombine.high %v206_v58, %v218_v3 }
 0x29f   :  { %v495_v16 = vrot.slane %v487_v6, %v6381_v8  ;;  %v502_v17 = vrot.slane %v488_v7, %v6381_v8 }
 0x2a0   :  { %v224_v11 = vpop.permute.xlu1 %223 }
 0x2a1   :  { %v503_v12 = vcombine.low %v212_v62, %v224_v11  ;;  %v504_v13 = vcombine.high %v212_v62, %v224_v11  ;;  %v186_v14 = vpop.permute.xlu0 %185 }
 0x2a3   :  { %v511_v18 = vrot.slane %v503_v12, %v6381_v8  ;;  %v518_v19 = vrot.slane %v504_v13, %v6381_v8 }
 0x2a4   :  { %v210_v22 = vpop.permute.xlu1 %209 }
 0x2a5   :  { %v551_v23 = vcombine.low %v495_v16, %v511_v18  ;;  %v552_v24 = vcombine.high %v495_v16, %v511_v18  ;;  %v567_v25 = vcombine.low %v502_v17, %v518_v19  ;;  %v568_v26 = vcombine.high %v502_v17, %v518_v19  ;;  %v198_v27 = vpop.permute.xlu0 %197 }
 0x2a6   :  { %v299_v28 = vcombine.low %v210_v22, %v222_v4  ;;  %v300_v29 = vcombine.high %v210_v22, %v222_v4  ;;  %v267_v31 = vcombine.low %v186_v14, %v198_v27  ;;  %v268_v32 = vcombine.high %v186_v14, %v198_v27 }
 0x2a7   :  { %v559_v33 = vrot.slane %v551_v23, %v6384_v15  ;;  %v566_v34 = vrot.slane %v552_v24, %v6384_v15  ;;  %v575_v35 = vrot.slane %v567_v25, %v6384_v15  ;;  %v582_v36 = vrot.slane %v568_v26, %v6384_v15 }
 0x2a8   :  { %v307_v37 = vrot.slane %v299_v28, %v6381_v8  ;;  %v314_v38 = vrot.slane %v300_v29, %v6381_v8  ;;  %v275_v39 = vrot.slane %v267_v31, %v6381_v8  ;;  %v282_v40 = vrot.slane %v268_v32, %v6381_v8  ;;  %v188_v42 = vpop.permute.xlu1 %187 }
 0x2a9   :  { %v5388_v43 = vcombine.low %v559_v33, %v566_v34  ;;  %v5390_v44 = vcombine.high %v559_v33, %v566_v34  ;;  %v5392_v45 = vcombine.low %v575_v35, %v582_v36  ;;  %v5394_v46 = vcombine.high %v575_v35, %v582_v36  ;;  %v194_v51 = vpop.permute.xlu0 %193 }
 0x2aa   :  { %v347_v47 = vcombine.low %v291_v20, %v307_v37  ;;  %v348_v48 = vcombine.high %v291_v20, %v307_v37  ;;  %v363_v49 = vcombine.low %v298_v21, %v314_v38  ;;  %v364_v50 = vcombine.high %v298_v21, %v314_v38 }
 0x2ab   :  { %v6401_v53 = vrot.slane %v5388_v43, %v6381_v8  ;;  %v6404_v54 = vrot.slane %v5390_v44, %v6381_v8  ;;  %v6407_v56 = vrot.slane %v5392_v45, %v6381_v8  ;;  %v6410_v58 = vrot.slane %v5394_v46, %v6381_v8 }
 0x2ac   :  { %v355_v59 = vrot.slane %v347_v47, %v6384_v15  ;;  %v362_v60 = vrot.slane %v348_v48, %v6384_v15  ;;  %v371_v61 = vrot.slane %v363_v49, %v6384_v15  ;;  %v378_v62 = vrot.slane %v364_v50, %v6384_v15  ;;  %v192_v63 = vpop.permute.xlu1 %191 }
 0x2ad   :  { %v455_v0 = vcombine.low %v6348_v55, %v194_v51  ;;  %v456_v1 = vcombine.high %v6348_v55, %v194_v51  ;;  %v251_v2 = vcombine.low %v6350_v57, %v192_v63  ;;  %v252_v3 = vcombine.high %v6350_v57, %v192_v63 }
 0x2ae   :  { %v5380_v4 = vcombine.low %v355_v59, %v362_v60  ;;  %v5382_v5 = vcombine.high %v355_v59, %v362_v60  ;;  %v5384_v6 = vcombine.low %v371_v61, %v378_v62  ;;  %v5386_v7 = vcombine.high %v371_v61, %v378_v62 }
 0x2af   :  { %v463_v9 = vrot.slane %v455_v0, %v6381_v8  ;;  %v470_v10 = vrot.slane %v456_v1, %v6381_v8  ;;  %v259_v11 = vrot.slane %v251_v2, %v6381_v8  ;;  %v266_v12 = vrot.slane %v252_v3, %v6381_v8 }
 0x2b0   :  { %v674_v13 = vrot.slane %v5380_v4, %v6381_v8  ;;  %v690_v14 = vrot.slane %v5382_v5, %v6381_v8  ;;  %v706_v16 = vrot.slane %v5384_v6, %v6381_v8  ;;  %v722_v17 = vrot.slane %v5386_v7, %v6381_v8  ;;  %v200_v18 = vpop.permute.xlu1 %199 }
 0x2b1   :  { %v315_v19 = vcombine.low %v259_v11, %v275_v39  ;;  %v316_v20 = vcombine.high %v259_v11, %v275_v39  ;;  %v331_v21 = vcombine.low %v266_v12, %v282_v40  ;;  %v332_v22 = vcombine.high %v266_v12, %v282_v40 }
 0x2b2   :  { %v471_v23 = vcombine.low %v188_v42, %v200_v18  ;;  %v472_v24 = vcombine.high %v188_v42, %v200_v18  ;;  %v739_v25 = vcombine.low %v674_v13, %v690_v14  ;;  %v771_v26 = vcombine.low %v706_v16, %v722_v17 }
 0x2b3   :  { %v323_v27 = vrot.slane %v315_v19, %v6384_v15  ;;  %v330_v28 = vrot.slane %v316_v20, %v6384_v15  ;;  %v339_v29 = vrot.slane %v331_v21, %v6384_v15  ;;  %v346_v31 = vrot.slane %v332_v22, %v6384_v15 }
 0x2b4   :  { %v479_v32 = vrot.slane %v471_v23, %v6381_v8  ;;  %v486_v33 = vrot.slane %v472_v24, %v6381_v8  ;;  %v747_v34 = vrot.slane %v739_v25, %v6384_v15  ;;  %v779_v35 = vrot.slane %v771_v26, %v6384_v15 }
 0x2b5   :  { %v5379_v36 = vcombine.low %v323_v27, %v330_v28  ;;  %v5381_v37 = vcombine.high %v323_v27, %v330_v28  ;;  %v5383_v38 = vcombine.low %v339_v29, %v346_v31  ;;  %v5385_v39 = vcombine.high %v339_v29, %v346_v31 }
 0x2b6   :  { %v519_v40 = vcombine.low %v463_v9, %v479_v32  ;;  %v520_v42 = vcombine.high %v463_v9, %v479_v32  ;;  %v535_v43 = vcombine.low %v470_v10, %v486_v33  ;;  %v536_v44 = vcombine.high %v470_v10, %v486_v33 }
 0x2b7   :  { %v667_v45 = vrot.slane %v5379_v36, %v6381_v8  ;;  %v683_v46 = vrot.slane %v5381_v37, %v6381_v8  ;;  %v699_v47 = vrot.slane %v5383_v38, %v6381_v8  ;;  %v715_v48 = vrot.slane %v5385_v39, %v6381_v8 }
 0x2b8   :  { %v527_v49 = vrot.slane %v519_v40, %v6384_v15  ;;  %v534_v50 = vrot.slane %v520_v42, %v6384_v15  ;;  %v543_v51 = vrot.slane %v535_v43, %v6384_v15  ;;  %v550_v59 = vrot.slane %v536_v44, %v6384_v15 }
 0x2b9   :  { %v791_v60 = vcombine.low %v747_v34, %v779_v35  ;;  %v875_v61 = vcombine.low %v6401_v53, %v6404_v54  ;;  %v907_v62 = vcombine.low %v6407_v56, %v6410_v58  ;;  %v740_v63 = vcombine.high %v674_v13, %v690_v14 }
 0x2ba   :  { %v5387_v0 = vcombine.low %v527_v49, %v534_v50  ;;  %v5389_v1 = vcombine.high %v527_v49, %v534_v50  ;;  %v5391_v2 = vcombine.low %v543_v51, %v550_v59  ;;  %v5393_v3 = vcombine.high %v543_v51, %v550_v59 }
 0x2bb   :  { %v883_v4 = vrot.slane %v875_v61, %v6384_v15  ;;  %v915_v5 = vrot.slane %v907_v62, %v6384_v15  ;;  %v754_v6 = vrot.slane %v740_v63, %v6384_v15  ;;  %v772_v7 = vcombine.high %v706_v16, %v722_v17  ;;  %v33_v62 = vld [vmem:[%s7356_s2] sm:$0xff] }
 0x2bc   :  { %v803_v9 = vrot.slane %v5387_v0, %v6381_v8  ;;  %v819_v10 = vrot.slane %v5389_v1, %v6381_v8  ;;  %v835_v11 = vrot.slane %v5391_v2, %v6381_v8  ;;  %v851_v12 = vrot.slane %v5393_v3, %v6381_v8 }
 0x2bd   :  { %v927_v13 = vcombine.low %v883_v4, %v915_v5  ;;  %v786_v14 = vrot.slane %v772_v7, %v6384_v15  ;;  %v876_v18 = vcombine.high %v6401_v53, %v6404_v54  ;;  %v908_v19 = vcombine.high %v6407_v56, %v6410_v58 }
 0x2be   :  { %v859_v20 = vcombine.low %v803_v9, %v819_v10  ;;  %v891_v21 = vcombine.low %v835_v11, %v851_v12  ;;  %v792_v17 = vcombine.high %v747_v34, %v779_v35  ;;  %v928_v22 = vcombine.high %v883_v4, %v915_v5 }
 0x2bf   :  { %v5923_v23 = vpack.c.bf16 %v927_v13, %v791_v60  ;;  %v793_v24 = vcombine.low %v754_v6, %v786_v14  ;;  %v890_v25 = vrot.slane %v876_v18, %v6384_v15  ;;  %v922_v26 = vrot.slane %v908_v19, %v6384_v15  ;;  %v34_v60 = vld [vmem:[%s7356_s2 + $0x8] sm:$0xff]  ;;  %s6260_s2 = smov 64  }
 0x2c0   :  { %v5929_v53 = vpack.c.bf16 %v928_v22, %v792_v17  ;;  %v723_v54 = vcombine.low %v667_v45, %v683_v46  ;;  %v755_v27 = vcombine.low %v699_v47, %v715_v48  ;;  %v724_v56 = vcombine.high %v667_v45, %v683_v46 }
 0x2c1   :  { %5925 = vmatprep.subr.msk.bf16.mxu0 %vm6462_vm6, %v5923_v23  ;;  %v756_v58 = vcombine.high %v699_v47, %v715_v48  ;;  %v867_v28 = vrot.slane %v859_v20, %v6384_v15  ;;  %v899_v29 = vrot.slane %v891_v21, %v6384_v15  ;;  %v929_v31 = vcombine.low %v890_v25, %v922_v26 }
 0x2c2   :  { %5928 = vmatpush3.bf16.xpose.msk.msra.mxu0 %vm6462_vm6, %v5923_v23  ;;  %v731_v32 = vrot.slane %v723_v54, %v6384_v15  ;;  %v763_v33 = vrot.slane %v755_v27, %v6384_v15  ;;  %v738_v34 = vrot.slane %v724_v56, %v6384_v15  ;;  %v860_v36 = vcombine.high %v803_v9, %v819_v10 }
 0x2c3   :  { %5931 = vmatprep.subr.msk.bf16.mxu0 %vm6462_vm6, %v5929_v53  ;;  %v770_v35 = vrot.slane %v756_v58, %v6384_v15  ;;  %v5935_v37 = vpack.c.bf16 %v929_v31, %v793_v24  ;;  %v892_v39 = vcombine.high %v835_v11, %v851_v12  ;;  %v794_v40 = vcombine.high %v754_v6, %v786_v14 }
 0x2c4   :  { %v787_v38 = vcombine.low %v731_v32, %v763_v33  ;;  %v923_v43 = vcombine.low %v867_v28, %v899_v29  ;;  %v874_v44 = vrot.slane %v860_v36, %v6384_v15  ;;  %v930_v46 = vcombine.high %v890_v25, %v922_v26 }
 0x2c5   :  { %v789_v42 = vcombine.low %v738_v34, %v770_v35  ;;  %5937 = vmatprep.subr.msk.bf16.mxu1 %vm6462_vm6, %v5935_v37  ;;  %v906_v45 = vrot.slane %v892_v39, %v6384_v15  ;;  %v788_v47 = vcombine.high %v731_v32, %v763_v33  ;;  %v924_v50 = vcombine.high %v867_v28, %v899_v29 }
 0x2c6   :  { %5682 = vmatprep.mubr.msk.f32.mxu0 %vm1067_vm5, %v787_v38  ;;  %5940 = vmatpush3.bf16.xpose.msk.msra.mxu1 %vm6462_vm6, %v5935_v37  ;;  %v5941_v48 = vpack.c.bf16 %v930_v46, %v794_v40  ;;  %v790_v51 = vcombine.high %v738_v34, %v770_v35 }
 0x2c7   :  { %5696 = vmatprep.mubr.msk.f32.mxu1 %vm1067_vm5, %v789_v42  ;;  %v925_v49 = vcombine.low %v874_v44, %v906_v45  ;;  %v926_v59 = vcombine.high %v874_v44, %v906_v45 }
 0x2c9   :  { %5683 = vmatmul.mubr.msk.f32.vlgmr.msra.gmra.mrb[2].mxu0 %vm1067_vm5, %v923_v43 }
 0x2ca   :  { %5934 = vmatpush3.bf16.xpose.msk.msra.mxu0 %vm6462_vm6, %v5929_v53  ;;  %5689 = vmatprep.mubr.msk.f32.mxu0 %vm1067_vm5, %v788_v47 }
 0x2cb   :  { %5943 = vmatprep.subr.msk.bf16.mxu0 %vm6462_vm6, %v5941_v48 }
 0x2cd   :  { %5697 = vmatmul.mubr.msk.f32.vlgmr.msra.gmra.mrb[0].mxu1 %vm1067_vm5, %v925_v49 }
 0x2d1   :  { %5690 = vmatmul.mubr.msk.f32.vlgmr.msra.gmra.mrb[4].mxu0 %vm1067_vm5, %v924_v50 }
 0x2d2   :  { %5946 = vmatpush3.bf16.xpose.msk.msra.mxu0 %vm6462_vm6, %v5941_v48  ;;  %5703 = vmatprep.mubr.msk.f32.mxu0 %vm1067_vm5, %v790_v51 }
 0x2d9   :  { %5704 = vmatmul.mubr.msk.f32.vlgmr.msra.gmra.mrb[6].mxu0 %vm1067_vm5, %v926_v59 }
 0x39c   :  { %v5684_v61 = vpop.f32.mrb[2].mxu0 }
 0x39d   :  { %v1152_v63 = vadd.f32 %v5684_v61, %v34_v60  ;;  %v1146_v0 = vpop.f32.mrb[3].mxu0 }
 0x39e   :  { %v1147_v1 = vadd.f32 %v1146_v0, %v33_v62 }
 0x39f   :  { %v1420_v2 = vsel %vm1416_vm7, %v1152_v63, -inf }
 0x3a0   :  { %1421 = vmax.xlane.f32.xlu0 %v1420_v2  ;;  %v5698_v3 = vpop.f32.mrb[0].mxu1  ;;  %v1417_v6 = vsel %vm1416_vm7, %v1147_v1, -inf }
 0x3a1   :  { %v1320_v4 = vpop.f32.mrb[1].mxu1  ;;  %v1326_v14 = vadd.f32 %v5698_v3, %v34_v60 }
 0x3a2   :  { %v1321_v5 = vadd.f32 %v1320_v4, %v33_v62 }
 0x3a3   :  { %v1432_v17 = vsel %vm1416_vm7, %v1326_v14, -inf }
 0x3a4   :  { %v5691_v7 = vpop.f32.mrb[4].mxu0  ;;  %1418 = vmax.xlane.f32.xlu0 %v1417_v6  ;;  %v1429_v12 = vsel %vm1416_vm7, %v1321_v5, -inf }
 0x3a5   :  { %v1233_v9 = vpop.f32.mrb[5].mxu0  ;;  %v1239_v11 = vadd.f32 %v5691_v7, %v34_v60 }
 0x3a6   :  { %v1234_v10 = vadd.f32 %v1233_v9, %v33_v62 }
 0x3a7   :  { %v1426_v18 = vsel %vm1416_vm7, %v1239_v11, -inf }
 0x3a8   :  { %v1423_v13 = vsel %vm1416_vm7, %v1234_v10, -inf  ;;  %1430 = vmax.xlane.f32.xlu0 %v1429_v12 }
 0x3a9   :  { %1424 = vmax.xlane.f32.xlu1 %v1423_v13 }
 0x3ac   :  { %v5705_v19 = vpop.f32.mrb[6].mxu0  ;;  %1427 = vmax.xlane.f32.xlu0 %v1426_v18 }
 0x3ad   :  { %v1407_v20 = vpop.f32.mrb[7].mxu0  ;;  %v1413_v22 = vadd.f32 %v5705_v19, %v34_v60 }
 0x3ae   :  { %v1408_v21 = vadd.f32 %v1407_v20, %v33_v62 }
 0x3af   :  { %v1438_v24 = vsel %vm1416_vm7, %v1413_v22, -inf }
 0x3b0   :  { %v1435_v23 = vsel %vm1416_vm7, %v1408_v21, -inf  ;;  %1433 = vmax.xlane.f32.xlu0 %v1432_v17 }
 0x3b1   :  { %1436 = vmax.xlane.f32.xlu1 %v1435_v23 }
 0x3b5   :  { %1439 = vmax.xlane.f32.xlu1 %v1438_v24 }
 0x3c6   :  { %229 = vrot.lane.b32.xlu1 %v6348_v55, %s6260_s2  ;;  %227 = vrot.lane.b32.xlu0 %v6350_v57, %s6260_s2 }
 0x3ca   :  { %233 = vrot.lane.b32.xlu1 %v6350_v57, %s6261_s28  ;;  %239 = vrot.lane.b32.xlu0 %v6350_v57, %s6262_s29 }
 0x3ce   :  { %235 = vrot.lane.b32.xlu1 %v6348_v55, %s6261_s28  ;;  %245 = vrot.lane.b32.xlu0 %v6350_v57, %s6263_s30 }
 0x3d2   :  { %241 = vrot.lane.b32.xlu1 %v6348_v55, %s6262_s29 }
 0x3d6   :  { %247 = vrot.lane.b32.xlu1 %v6348_v55, %s6263_s30 }
 0x42d   :  { %v1422_v25 = vpop.xlane.xlu0 %1421 }
 0x42e   :  { %v1442_v26 = vsub.f32 %v1152_v63, %v1422_v25 }
 0x430   :  { %v1451_v53 = vmul.f32 1.442695, %v1442_v26 }
 0x431   :  { %v1419_v54 = vpop.xlane.xlu0 %1418 }
 0x432   :  { %6141 = vpow2.f32 %v1451_v53  ;;  %v1441_v27 = vsub.f32 %v1147_v1, %v1419_v54 }
 0x434   :  { %v1449_v56 = vmul.f32 1.442695, %v1441_v27 }
 0x435   :  { %v1431_v58 = vpop.xlane.xlu0 %1430 }
 0x436   :  { %6143 = vpow2.f32 %v1449_v56  ;;  %v1425_v28 = vpop.xlane.xlu1 %1424  ;;  %v1445_v29 = vsub.f32 %v1321_v5, %v1431_v58 }
 0x437   :  { %v1443_v31 = vsub.f32 %v1234_v10, %v1425_v28 }
 0x438   :  { %v1457_v32 = vmul.f32 1.442695, %v1445_v29 }
 0x439   :  { %v1428_v33 = vpop.xlane.xlu0 %1427  ;;  %v1453_v34 = vmul.f32 1.442695, %v1443_v31 }
 0x43a   :  { %6145 = vpow2.f32 %v1457_v32  ;;  %v1444_v57 = vsub.f32 %v1239_v11, %v1428_v33 }
 0x43c   :  { %v6522_v35 = vpop.eup %6141  ;;  %v1455_v55 = vmul.f32 1.442695, %v1444_v57 }
 0x43d   :  { %v1434_v36 = vpop.xlane.xlu0 %1433  ;;  %v1468_v37 = vsel %vm1416_vm7, %v6522_v35, 0.0 }
 0x43e   :  { %6147 = vpow2.f32 %v1455_v55  ;;  %v1437_v38 = vpop.xlane.xlu1 %1436  ;;  %v1446_v39 = vsub.f32 %v1326_v14, %v1434_v36  ;;  %1469 = vadd.xlane.f32.xlu0 %v1468_v37 }
 0x43f   :  { %6149 = vpow2.f32 %v1453_v34  ;;  %v1447_v40 = vsub.f32 %v1408_v21, %v1437_v38 }
 0x440   :  { %v6526_v42 = vpop.eup %6143  ;;  %v1459_v43 = vmul.f32 1.442695, %v1446_v39 }
 0x441   :  { %v1461_v44 = vmul.f32 1.442695, %v1447_v40  ;;  %v228_v45 = vpop.permute.xlu0 %227  ;;  %v1465_v46 = vsel %vm1416_vm7, %v6526_v42, 0.0 }
 0x442   :  { %6151 = vpow2.f32 %v1459_v43  ;;  %v1440_v47 = vpop.xlane.xlu1 %1439  ;;  %1466 = vadd.xlane.f32.xlu0 %v1465_v46 }
 0x443   :  { %v1448_v48 = vsub.f32 %v1413_v22, %v1440_v47  ;;  %6153 = vpow2.f32 %v1461_v44 }
 0x444   :  { %v6530_v49 = vpop.eup %6145 }
 0x445   :  { %v1463_v50 = vmul.f32 1.442695, %v1448_v48  ;;  %v240_v51 = vpop.permute.xlu0 %239  ;;  %v1477_v59 = vsel %vm1416_vm7, %v6530_v49, 0.0 }
 0x446   :  { %v230_v60 = vpop.permute.xlu1 %229  ;;  %1478 = vadd.xlane.f32.xlu0 %v1477_v59  ;;  %v387_v62 = vcombine.low %v228_v45, %v240_v51  ;;  %v388_v0 = vcombine.high %v228_v45, %v240_v51 }
 0x447   :  { %6155 = vpow2.f32 %v1463_v50 }
 0x448   :  { %v6534_v61 = vpop.eup %6147  ;;  %v395_v7 = vrot.slane %v387_v62, %v6381_v8  ;;  %v402_v10 = vrot.slane %v388_v0, %v6381_v8 }
 0x449   :  { %v6536_v63 = vpop.eup %6149  ;;  %v246_v1 = vpop.permute.xlu0 %245  ;;  %v1474_v2 = vsel %vm1416_vm7, %v6534_v61, 0.0 }
 0x44a   :  { %v234_v3 = vpop.permute.xlu1 %233  ;;  %1475 = vadd.xlane.f32.xlu1 %v1474_v2  ;;  %v1471_v9 = vsel %vm1416_vm7, %v6536_v63, 0.0 }
 0x44b   :  { %v403_v4 = vcombine.low %v234_v3, %v246_v1  ;;  %v404_v5 = vcombine.high %v234_v3, %v246_v1 }
 0x44c   :  { %v6540_v6 = vpop.eup %6151 }
 0x44d   :  { %v411_v11 = vrot.slane %v403_v4, %v6381_v8  ;;  %v418_v12 = vrot.slane %v404_v5, %v6381_v8  ;;  %v1480_v13 = vsel %vm1416_vm7, %v6540_v6, 0.0  ;;  %v6550_v14 = vpop.eup %6153 }
 0x44e   :  { %v236_v18 = vpop.permute.xlu1 %235  ;;  %1472 = vadd.xlane.f32.xlu1 %v1471_v9  ;;  %1481 = vadd.xlane.f32.xlu0 %v1480_v13  ;;  %v1483_v24 = vsel %vm1416_vm7, %v6550_v14, 0.0 }
 0x44f   :  { %v419_v19 = vcombine.low %v395_v7, %v411_v11  ;;  %v420_v20 = vcombine.high %v395_v7, %v411_v11  ;;  %v435_v21 = vcombine.low %v402_v10, %v418_v12  ;;  %v436_v17 = vcombine.high %v402_v10, %v418_v12 }
 0x451   :  { %v6552_v22 = vpop.eup %6155  ;;  %v427_v23 = vrot.slane %v419_v19, %v6384_v15  ;;  %v434_v25 = vrot.slane %v420_v20, %v6384_v15  ;;  %v443_v26 = vrot.slane %v435_v21, %v6384_v15  ;;  %v450_v53 = vrot.slane %v436_v17, %v6384_v15 }
 0x452   :  { %v242_v54 = vpop.permute.xlu1 %241  ;;  %1484 = vadd.xlane.f32.xlu1 %v1483_v24  ;;  %v1486_v27 = vsel %vm1416_vm7, %v6552_v22, 0.0 }
 0x453   :  { %1487 = vadd.xlane.f32.xlu0 %v1486_v27  ;;  %v591_v56 = vcombine.low %v230_v60, %v242_v54  ;;  %v592_v58 = vcombine.high %v230_v60, %v242_v54  ;;  %v931_v28 = vcombine.low %v427_v23, %v434_v25  ;;  %v5395_v29 = vcombine.high %v427_v23, %v434_v25 }
 0x454   :  { %v947_v31 = vcombine.low %v443_v26, %v450_v53  ;;  %v5396_v32 = vcombine.high %v443_v26, %v450_v53 }
 0x455   :  { %v599_v55 = vrot.slane %v591_v56, %v6381_v8  ;;  %v606_v36 = vrot.slane %v592_v58, %v6381_v8  ;;  %v938_v39 = vrot.slane %v931_v28, %v6381_v8  ;;  %v946_v40 = vrot.slane %v5395_v29, %v6381_v8 }
 0x456   :  { %v248_v33 = vpop.permute.xlu1 %247  ;;  %v954_v43 = vrot.slane %v947_v31, %v6381_v8  ;;  %v962_v44 = vrot.slane %v5396_v32, %v6381_v8 }
 0x457   :  { %v607_v57 = vcombine.low %v236_v18, %v248_v33  ;;  %v608_v34 = vcombine.high %v236_v18, %v248_v33  ;;  %v963_v62 = vcombine.low %v938_v39, %v946_v40  ;;  %v964_v5 = vcombine.high %v938_v39, %v946_v40 }
 0x458   :  { %v979_v0 = vcombine.low %v954_v43, %v962_v44  ;;  %v980_v7 = vcombine.high %v954_v43, %v962_v44 }
 0x459   :  { %v615_v37 = vrot.slane %v607_v57, %v6381_v8  ;;  %v622_v38 = vrot.slane %v608_v34, %v6381_v8  ;;  %v971_v13 = vrot.slane %v963_v62, %v6384_v15  ;;  %v978_v23 = vrot.slane %v964_v5, %v6384_v15 }
 0x45a   :  { %v987_v18 = vrot.slane %v979_v0, %v6384_v15  ;;  %v994_v24 = vrot.slane %v980_v7, %v6384_v15 }
 0x45b   :  { %v623_v45 = vcombine.low %v599_v55, %v615_v37  ;;  %v624_v46 = vcombine.high %v599_v55, %v615_v37  ;;  %v639_v47 = vcombine.low %v606_v36, %v622_v38  ;;  %v640_v48 = vcombine.high %v606_v36, %v622_v38 }
 0x45c   :  { %v995_v27 = vcombine.low %v971_v13, %v987_v18  ;;  %v996_v56 = vcombine.high %v971_v13, %v987_v18  ;;  %v997_v57 = vcombine.low %v978_v23, %v994_v24  ;;  %v998_v34 = vcombine.high %v978_v23, %v994_v24 }
 0x45d   :  { %v631_v50 = vrot.slane %v623_v45, %v6384_v15  ;;  %v638_v51 = vrot.slane %v624_v46, %v6384_v15  ;;  %v647_v59 = vrot.slane %v639_v47, %v6384_v15  ;;  %v654_v60 = vrot.slane %v640_v48, %v6384_v15 }
 0x45f   :  { %v999_v1 = vcombine.low %v631_v50, %v638_v51  ;;  %v5397_v2 = vcombine.high %v631_v50, %v638_v51  ;;  %v1015_v3 = vcombine.low %v647_v59, %v654_v60  ;;  %v5398_v4 = vcombine.high %v647_v59, %v654_v60 }
 0x461   :  { %v1006_v9 = vrot.slane %v999_v1, %v6381_v8  ;;  %v1014_v10 = vrot.slane %v5397_v2, %v6381_v8  ;;  %v1022_v11 = vrot.slane %v1015_v3, %v6381_v8  ;;  %v1030_v12 = vrot.slane %v5398_v4, %v6381_v8 }
 0x463   :  { %v1031_v19 = vcombine.low %v1006_v9, %v1014_v10  ;;  %v1047_v20 = vcombine.low %v1022_v11, %v1030_v12  ;;  %v1032_v21 = vcombine.high %v1006_v9, %v1014_v10  ;;  %v1048_v17 = vcombine.high %v1022_v11, %v1030_v12 }
 0x465   :  { %v1039_v25 = vrot.slane %v1031_v19, %v6384_v15  ;;  %v1055_v26 = vrot.slane %v1047_v20, %v6384_v15  ;;  %v1046_v53 = vrot.slane %v1032_v21, %v6384_v15  ;;  %v1062_v54 = vrot.slane %v1048_v17, %v6384_v15 }
 0x467   :  { %v1063_v58 = vcombine.low %v1039_v25, %v1055_v26  ;;  %v1064_v28 = vcombine.high %v1039_v25, %v1055_v26  ;;  %v1065_v29 = vcombine.low %v1046_v53, %v1062_v54  ;;  %v1066_v31 = vcombine.high %v1046_v53, %v1062_v54 }
 0x469   :  { %v5947_v32 = vpack.c.bf16 %v1063_v58, %v995_v27  ;;  %v5951_v33 = vpack.c.bf16 %v1064_v28, %v996_v56  ;;  %v5955_v55 = vpack.c.bf16 %v1065_v29, %v997_v57  ;;  %v5959_v36 = vpack.c.bf16 %v1066_v31, %v998_v34 }
 0x46b   :  { %5948 = vmatprep.subr.bf16.mxu0 %v5947_v32  ;;  %5952 = vmatprep.subr.bf16.mxu1 %v5951_v33 }
 0x46c   :  { %5950 = vmatpush3.bf16.msra.mxu0 %v5947_v32  ;;  %5954 = vmatpush3.bf16.msra.mxu1 %v5951_v33 }
 0x46d   :  { %5956 = vmatprep.subr.bf16.mxu0 %v5955_v55  ;;  %5960 = vmatprep.subr.bf16.mxu1 %v5959_v36 }
 0x4cb   :  { %v1470_v37 = vpop.xlane.xlu0 %1469 }
 0x4cc   :  { %6157 = vrcp.f32 %v1470_v37 }
 0x4cf   :  { %v1467_v38 = vpop.xlane.xlu0 %1466 }
 0x4d0   :  { %6159 = vrcp.f32 %v1467_v38 }
 0x4d3   :  { %v1479_v39 = vpop.xlane.xlu0 %1478 }
 0x4d4   :  { %6161 = vrcp.f32 %v1479_v39 }
 0x4d6   :  { %v6158_v43 = vpop.eup %6157 }
 0x4d7   :  { %v1476_v40 = vpop.xlane.xlu1 %1475  ;;  %v1498_v48 = vmul.f32 %v6158_v43, %v6522_v35 }
 0x4d8   :  { %6163 = vrcp.f32 %v1476_v40 }
 0x4da   :  { %v6160_v44 = vpop.eup %6159 }
 0x4db   :  { %v1473_v45 = vpop.xlane.xlu1 %1472  ;;  %v1482_v46 = vpop.xlane.xlu0 %1481  ;;  %v1497_v47 = vmul.f32 %v6160_v44, %v6526_v42 }
 0x4dc   :  { %6165 = vrcp.f32 %v1473_v45 }
 0x4dd   :  { %6167 = vrcp.f32 %v1482_v46  ;;  %5710 = vmatprep.mubr.msk.f32.mxu0 %vm1416_vm7, %v1497_v47 }
 0x4de   :  { %v6162_v50 = vpop.eup %6161  ;;  %5711 = vmatmul.mubr.msk.f32.vlgmr.msra.gmra.mrb[8].mxu0 %vm1416_vm7, %v1498_v48 }
 0x4df   :  { %5958 = vmatpush3.bf16.msra.mxu0 %v5955_v55  ;;  %v1485_v51 = vpop.xlane.xlu1 %1484  ;;  %v1501_v59 = vmul.f32 %v6162_v50, %v6530_v49 }
 0x4e0   :  { %6169 = vrcp.f32 %v1485_v51  ;;  %v1488_v60 = vpop.xlane.xlu0 %1487 }
 0x4e1   :  { %6171 = vrcp.f32 %v1488_v60  ;;  %5724 = vmatprep.mubr.msk.f32.mxu0 %vm1416_vm7, %v1501_v59 }
 0x4e2   :  { %v6164_v62 = vpop.eup %6163 }
 0x4e3   :  { %v1500_v1 = vmul.f32 %v6164_v62, %v6534_v61 }
 0x4e6   :  { %v6166_v42 = vpop.eup %6165 }
 0x4e7   :  { %v6168_v0 = vpop.eup %6167  ;;  %v1499_v35 = vmul.f32 %v6166_v42, %v6536_v63 }
 0x4e8   :  { %v1502_v2 = vmul.f32 %v6168_v0, %v6540_v6 }
 0x4e9   :  { %5717 = vmatprep.mubr.msk.f32.mxu1 %vm1416_vm7, %v1499_v35 }
 0x4ea   :  { %v6170_v3 = vpop.eup %6169  ;;  %5725 = vmatmul.mubr.msk.f32.vlgmr.msra.gmra.mrb[10].mxu0 %vm1416_vm7, %v1502_v2  ;;  %5718 = vmatmul.mubr.msk.f32.vlgmr.msra.gmra.mrb[2].mxu1 %vm1416_vm7, %v1500_v1 }
 0x4eb   :  { %v6172_v49 = vpop.eup %6171  ;;  %5962 = vmatpush3.bf16.msra.mxu1 %v5959_v36  ;;  %v1503_v4 = vmul.f32 %v6170_v3, %v6550_v14 }
 0x4ec   :  { %v1504_v5 = vmul.f32 %v6172_v49, %v6552_v22 }
 0x4ed   :  { %5731 = vmatprep.mubr.msk.f32.mxu1 %vm1416_vm7, %v1503_v4 }
 0x4ee   :  { %5732 = vmatmul.mubr.msk.f32.vlgmr.msra.gmra.mrb[4].mxu1 %vm1416_vm7, %v1504_v5 }
 0x5b1   :  { %v5712_v61 = vpop.f32.mrb[8].mxu0 }
 0x5b2   :  { %v1577_v63 = vpop.f32.mrb[9].mxu0 }
 0x5bd   :  { %v5726_v6 = vpop.f32.mrb[10].mxu0  ;;  %v5719_v7 = vpop.f32.mrb[2].mxu1 }
 0x5be   :  { %v1897_v9 = vcombine.low %v5712_v61, %v5726_v6  ;;  %v1898_v10 = vcombine.high %v5712_v61, %v5726_v6  ;;  %v1739_v11 = vpop.f32.mrb[11].mxu0  ;;  %v1658_v12 = vpop.f32.mrb[3].mxu1 }
 0x5bf   :  { %v1829_v13 = vcombine.low %v1577_v63, %v1739_v11  ;;  %v1830_v18 = vcombine.high %v1577_v63, %v1739_v11 }
 0x5c0   :  { %v1905_v23 = vrot.slane %v1897_v9, %v6381_v8  ;;  %v1912_v24 = vrot.slane %v1898_v10, %v6381_v8 }
 0x5c1   :  { %v5733_v19 = vpop.f32.mrb[4].mxu1  ;;  %v1837_v53 = vrot.slane %v1829_v13, %v6381_v8  ;;  %v1844_v54 = vrot.slane %v1830_v18, %v6381_v8 }
 0x5c2   :  { %v1913_v20 = vcombine.low %v5719_v7, %v5733_v19  ;;  %v1914_v21 = vcombine.high %v5719_v7, %v5733_v19  ;;  %v1820_v14 = vpop.f32.mrb[5].mxu1  ;;  %v5427_v19 = vld [vmem:[%s7358_s4 + $0x20] sm:$0xff] }
 0x5c3   :  { %v1845_v17 = vcombine.low %v1658_v12, %v1820_v14  ;;  %v1846_v22 = vcombine.high %v1658_v12, %v1820_v14 }
 0x5c4   :  { %v1921_v25 = vrot.slane %v1913_v20, %v6381_v8  ;;  %v1928_v26 = vrot.slane %v1914_v21, %v6381_v8 }
 0x5c5   :  { %v1853_v27 = vrot.slane %v1845_v17, %v6381_v8  ;;  %v1860_v56 = vrot.slane %v1846_v22, %v6381_v8  ;;  %v5428_v22 = vld [vmem:[%s7358_s4 + $0x28] sm:$0xff] }
 0x5c6   :  { %v1929_v58 = vcombine.low %v1905_v23, %v1921_v25  ;;  %v1930_v28 = vcombine.high %v1905_v23, %v1921_v25  ;;  %v1945_v29 = vcombine.low %v1912_v24, %v1928_v26  ;;  %v1946_v31 = vcombine.high %v1912_v24, %v1928_v26  ;;  %v5429_v23 = vld [vmem:[%s7358_s4 + $0x30] sm:$0xff]  ;;  %v5430_v24 = vld [vmem:[%s7358_s4 + $0x38] sm:$0xff] }
 0x5c7   :  { %v1861_v32 = vcombine.low %v1837_v53, %v1853_v27  ;;  %v1862_v33 = vcombine.high %v1837_v53, %v1853_v27  ;;  %v1877_v57 = vcombine.low %v1844_v54, %v1860_v56  ;;  %v1878_v34 = vcombine.high %v1844_v54, %v1860_v56 }
 0x5c8   :  { %v1937_v55 = vrot.slane %v1929_v58, %v6384_v15  ;;  %v1944_v36 = vrot.slane %v1930_v28, %v6384_v15  ;;  %v1953_v37 = vrot.slane %v1945_v29, %v6384_v15  ;;  %v1960_v38 = vrot.slane %v1946_v31, %v6384_v15 }
 0x5c9   :  { %v1869_v39 = vrot.slane %v1861_v32, %v6384_v15  ;;  %v1876_v40 = vrot.slane %v1862_v33, %v6384_v15  ;;  %v1885_v43 = vrot.slane %v1877_v57, %v6384_v15  ;;  %v1892_v44 = vrot.slane %v1878_v34, %v6384_v15 }
 0x5ca   :  { %v2033_v45 = vcombine.low %v1937_v55, %v1944_v36  ;;  %v5425_v46 = vcombine.high %v1937_v55, %v1944_v36  ;;  %v2049_v47 = vcombine.low %v1953_v37, %v1960_v38  ;;  %v5426_v48 = vcombine.high %v1953_v37, %v1960_v38 }
 0x5cb   :  { %v1965_v50 = vcombine.low %v1869_v39, %v1876_v40  ;;  %v5423_v51 = vcombine.high %v1869_v39, %v1876_v40  ;;  %v1981_v59 = vcombine.low %v1885_v43, %v1892_v44  ;;  %v5424_v60 = vcombine.high %v1885_v43, %v1892_v44 }
 0x5cc   :  { %v2040_v62 = vrot.slane %v2033_v45, %v6381_v8  ;;  %v2048_v42 = vrot.slane %v5425_v46, %v6381_v8  ;;  %v2056_v0 = vrot.slane %v2049_v47, %v6381_v8  ;;  %v2064_v35 = vrot.slane %v5426_v48, %v6381_v8  ;;  %v6664_v46 = vld [vmem:[%s7360_s6] sm:$0xff] }
 0x5cd   :  { %v1972_v1 = vrot.slane %v1965_v50, %v6381_v8  ;;  %v1980_v2 = vrot.slane %v5423_v51, %v6381_v8  ;;  %v1988_v3 = vrot.slane %v1981_v59, %v6381_v8  ;;  %v1996_v49 = vrot.slane %v5424_v60, %v6381_v8  ;;  %v6222_v60 = vld [vmem:[%s7354_s0 + $0x8] sm:$0xff] }
 0x5ce   :  { %v2065_v4 = vcombine.low %v2040_v62, %v2048_v42  ;;  %v2081_v5 = vcombine.low %v2056_v0, %v2064_v35  ;;  %v2066_v61 = vcombine.high %v2040_v62, %v2048_v42  ;;  %v2082_v63 = vcombine.high %v2056_v0, %v2064_v35  ;;  %v6223_v42 = vld [vmem:[%s7354_s0] sm:$0xff] }
 0x5cf   :  { %v1997_v6 = vcombine.low %v1972_v1, %v1980_v2  ;;  %v2013_v7 = vcombine.low %v1988_v3, %v1996_v49  ;;  %v1998_v9 = vcombine.high %v1972_v1, %v1980_v2  ;;  %v2014_v10 = vcombine.high %v1988_v3, %v1996_v49  ;;  %v5439_v2 = vld [vmem:[%s7358_s4 + $0x60] sm:$0xff]  ;;  %v5440_v3 = vld [vmem:[%s7358_s4 + $0x68] sm:$0xff] }
 0x5d0   :  { %v2073_v11 = vrot.slane %v2065_v4, %v6384_v15  ;;  %v2089_v12 = vrot.slane %v2081_v5, %v6384_v15  ;;  %v2080_v13 = vrot.slane %v2066_v61, %v6384_v15  ;;  %v2096_v18 = vrot.slane %v2082_v63, %v6384_v15  ;;  %v5441_v4 = vld [vmem:[%s7358_s4 + $0x70] sm:$0xff]  ;;  %v5442_v5 = vld [vmem:[%s7358_s4 + $0x78] sm:$0xff]  ;;  %v29_v61 = vld [vmem:[%s7355_s1] sm:$0xff] }
 0x5d1   :  { %v2005_v20 = vrot.slane %v1997_v6, %v6384_v15  ;;  %v2021_v21 = vrot.slane %v2013_v7, %v6384_v15  ;;  %v2012_v14 = vrot.slane %v1998_v9, %v6384_v15  ;;  %v2028_v17 = vrot.slane %v2014_v10, %v6384_v15  ;;  %v30_v6 = vld [vmem:[%s7355_s1 + $0x8] sm:$0xff]  ;;  %v31_v7 = vld [vmem:[%s7355_s1 + $0x10] sm:$0xff]  ;;  %v32_v9 = vld [vmem:[%s7355_s1 + $0x18] sm:$0xff] }
 0x5d2   :  { %v2098_v25 = vcombine.high %v2073_v11, %v2089_v12  ;;  %v2099_v26 = vcombine.low %v2080_v13, %v2096_v18  ;;  %v2100_v53 = vcombine.high %v2080_v13, %v2096_v18  ;;  %v2097_v54 = vcombine.low %v2073_v11, %v2089_v12 }
 0x5d3   :  { %v2030_v27 = vcombine.high %v2005_v20, %v2021_v21  ;;  %v2032_v56 = vcombine.high %v2012_v14, %v2028_v17  ;;  %v2031_v58 = vcombine.low %v2012_v14, %v2028_v17  ;;  %v2029_v28 = vcombine.low %v2005_v20, %v2021_v21 }
 0x5d4   :  { %2105 = vrot.lane.b32.xlu1 %v2098_v25, %s6264_s16  ;;  %v5963_v29 = vpack.c.bf16 %v5428_v22, %v5427_v19  ;;  %v5967_v31 = vpack.c.bf16 %v5430_v24, %v5429_v23  ;;  %v2139_v45 = vsub.s32 1, %v6331_v30  ;;  %v5979_v49 = vpack.c.bf16 %v5440_v3, %v5439_v2  ;;  %v5433_v22 = vld [vmem:[%s7358_s4 + $0x40] sm:$0xff]  ;;  %v5434_v23 = vld [vmem:[%s7358_s4 + $0x48] sm:$0xff]  ;;  %v5435_v24 = vld [vmem:[%s7358_s4 + $0x50] sm:$0xff] }
 0x5d5   :  { %2103 = vrot.lane.b32.xlu0 %v2030_v27, %s6264_s16  ;;  %v5983_v63 = vpack.c.bf16 %v5442_v5, %v5441_v4  ;;  %v5971_v25 = vpack.c.bf16 %v5434_v23, %v5433_v22 }
 0x5d6   :  { %5964 = vmatprep.subr.bf16.mxu0 %v5963_v29  ;;  %v2140_v47 = vrot.slane %v6664_v46, %v2139_v45 }
 0x5d7   :  { %5966 = vmatpush3.bf16.msra.mxu0 %v5963_v29  ;;  %5972 = vmatprep.subr.bf16.mxu1 %v5971_v25 }
 0x5d8   :  { %2113 = vrot.lane.b32.xlu1 %v2099_v26, %s6265_s24  ;;  %5968 = vmatprep.subr.bf16.mxu0 %v5967_v31  ;;  %v5436_v26 = vld [vmem:[%s7358_s4 + $0x58] sm:$0xff] }
 0x5d9   :  { %2119 = vrot.lane.b32.xlu0 %v2032_v56, %s6266_s25  ;;  %5974 = vmatpush3.bf16.msra.mxu1 %v5971_v25 }
 0x5db   :  { %5970 = vmatpush3.bf16.msra.mxu0 %v5967_v31 }
 0x5dc   :  { %2111 = vrot.lane.b32.xlu1 %v2031_v58, %s6265_s24  ;;  %5980 = vmatprep.subr.bf16.mxu0 %v5979_v49 }
 0x5e0   :  { %2121 = vrot.lane.b32.xlu1 %v2100_v53, %s6266_s25  ;;  %v5975_v53 = vpack.c.bf16 %v5436_v26, %v5435_v24 }
 0x5e2   :  { %5976 = vmatprep.subr.bf16.mxu1 %v5975_v53 }
 0x5e3   :  { %5978 = vmatpush3.bf16.msra.mxu1 %v5975_v53 }
 0x646   :  { %v2106_v32 = vpop.permute.xlu1 %2105 }
 0x647   :  { %v2104_v33 = vpop.permute.xlu0 %2103  ;;  %v2126_v39 = vsel %vm1067_vm5, %v2097_v54, %v2106_v32  ;;  %v2272_v54 = vsub.s32 3, %v6331_v30 }
 0x648   :  { %v2125_v34 = vsel %vm1067_vm5, %v2029_v28, %v2104_v33 }
 0x649   :  { %v2374_v27 = vrot.slane %v6664_v46, %v2272_v54 }
 0x64a   :  { %v2114_v57 = vpop.permute.xlu1 %2113 }
 0x64b   :  { %v2120_v36 = vpop.permute.xlu0 %2119  ;;  %v2128_v40 = vsel %vm1416_vm7, %v2126_v39, %v2114_v57 }
 0x64e   :  { %v2112_v55 = vpop.permute.xlu1 %2111 }
 0x64f   :  { %v2127_v37 = vsel %vm1416_vm7, %v2125_v34, %v2112_v55 }
 0x650   :  { %v2130_v38 = vsel %vm2129_vm8, %v2127_v37, %v2120_v36 }
 0x651   :  { %5742 = vmatprep.mubr.msk.f32.mxu0 %vm39_vm0, %v2130_v38 }
 0x652   :  { %v2122_v43 = vpop.permute.xlu1 %2121 }
 0x653   :  { %v2131_v44 = vsel %vm2129_vm8, %v2128_v40, %v2122_v43 }
 0x654   :  { %5743 = vmatmul.mubr.msk.f32.vlgmr.msra.gmra.mrb[12].mxu0 %vm39_vm0, %v2131_v44 }
 0x655   :  { %5982 = vmatpush3.bf16.msra.mxu0 %v5979_v49  ;;  %5764 = vmatprep.mubr.msk.f32.mxu0 %vm39_vm0, %v29_v61 }
 0x656   :  { %5984 = vmatprep.subr.bf16.mxu0 %v5983_v63 }
 0x659   :  { %5986 = vmatpush3.bf16.msra.mxu0 %v5983_v63 }
 0x65c   :  { %5765 = vmatmul.mubr.msk.f32.vlgmr.msra.gmra.mrb[14].mxu0 %vm39_vm0, %v30_v6 }
 0x65d   :  { %5767 = vmatprep.mubr.msk.f32.mxu0 %vm39_vm0, %v31_v7 }
 0x660   :  { %5768 = vmatmul.mubr.msk.f32.gmra.mrb[16].mxu0 %vm39_vm0, %v32_v9 }
 0x727   :  { %v5744_v48 = vpop.f32.mrb[12].mxu0 }
 0x728   :  { %v2219_v50 = vadd.f32 %v5744_v48, %v2140_v47  ;;  %v2213_v51 = vpop.f32.mrb[13].mxu0 }
 0x729   :  { %v2214_v59 = vadd.f32 %v2213_v51, %v2140_v47 }
 0x72a   :  { %v6672_v62 = vadd.f32 %v6222_v60, %v2219_v50 }
 0x72b   :  { %v6677_v0 = vadd.f32 %v6223_v42, %v2214_v59 }
 0x72c   :  { %v2227_v35 = vsel %vm39_vm0, %v6672_v62, 0.0 }
 0x72d   :  { %2228 = vadd.xlane.f32.xlu1 %v2227_v35  ;;  %v2224_v1 = vsel %vm39_vm0, %v6677_v0, 0.0  ;;  %v6224_v35 = vld [vmem:[%s7360_s6 + $0x8] sm:$0xff] }
 0x72e   :  { %2225 = vadd.xlane.f32.xlu0 %v2224_v1  ;;  %v2265_v1 = vrot.slane %v6224_v35, %v100_v52  ;;  %v2273_v3 = vrot.slane %v6224_v35, %v2272_v54 }
 0x72f   :  { %v5766_v56 = vpop.f32.mrb[14].mxu0 }
 0x730   :  { %v6737_v58 = vadd.f32 %v5766_v56, %v2374_v27  ;;  %v2453_v28 = vpop.f32.mrb[15].mxu0 }
 0x731   :  { %v6739_v29 = vadd.f32 %v2453_v28, %v2374_v27 }
 0x733   :  { %v5769_v31 = vpop.f32.mrb[16].mxu0 }
 0x734   :  { %v2463_v32 = vpop.f32.mrb[17].mxu0  ;;  %v6755_v57 = vadd.f32 %v5769_v31, %v2374_v27 }
 0x735   :  { %v6749_v33 = vadd.f32 %v2463_v32, %v2374_v27 }
 0x73e   :  { %2770 = vrot.lane.b32.xlu1 %v6737_v58, %s6255_s21 }
 0x742   :  { %2780 = vrot.lane.b32.xlu1 %v6739_v29, %s6257_s23 }
 0x746   :  { %2782 = vrot.lane.b32.xlu1 %v6737_v58, %s6257_s23 }
 0x74a   :  { %2794 = vrot.lane.b32.xlu1 %v6737_v58, %s6256_s22 }
 0x74e   :  { %2774 = vrot.lane.b32.xlu1 %v6755_v57, %s6255_s21 }
 0x752   :  { %2786 = vrot.lane.b32.xlu1 %v6755_v57, %s6257_s23 }
 0x756   :  { %2798 = vrot.lane.b32.xlu1 %v6755_v57, %s6256_s22 }
 0x7ba   :  { %v2229_v10 = vpop.xlane.xlu1 %2228 }
 0x7bb   :  { %v2231_v11 = vmul.f32 0.03125, %v2229_v10  ;;  %v2226_v12 = vpop.xlane.xlu0 %2225 }
 0x7bc   :  { %v2230_v13 = vmul.f32 0.03125, %v2226_v12 }
 0x7bd   :  { %v6712_v18 = vsub.f32 %v6672_v62, %v2231_v11 }
 0x7be   :  { %v6715_v19 = vsub.f32 %v6677_v0, %v2230_v13  ;;  %v2771_v9 = vpop.permute.xlu1 %2770 }
 0x7bf   :  { %v2235_v14 = vmul.f32 %v6712_v18, %v6712_v18  ;;  %v2267_v5 = vmul.f32 %v2265_v1, %v6712_v18 }
 0x7c0   :  { %v2234_v20 = vmul.f32 %v6715_v19, %v6715_v19  ;;  %v2266_v2 = vmul.f32 %v2265_v1, %v6715_v19 }
 0x7c1   :  { %v2239_v17 = vsel %vm39_vm0, %v2235_v14, 0.0 }
 0x7c2   :  { %v2236_v21 = vsel %vm39_vm0, %v2234_v20, 0.0  ;;  %v2781_v11 = vpop.permute.xlu1 %2780 }
 0x7c3   :  { %2237 = vadd.xlane.f32.xlu0 %v2236_v21  ;;  %v2852_v52 = vcombine.low %v6739_v29, %v2781_v11  ;;  %v2853_v12 = vcombine.high %v6739_v29, %v2781_v11 }
 0x7c5   :  { %v2860_v18 = vrot.slane %v2852_v52, %v6381_v8  ;;  %v2867_v21 = vrot.slane %v2853_v12, %v6381_v8 }
 0x7c6   :  { %v2783_v14 = vpop.permute.xlu1 %2782 }
 0x7c7   :  { %2240 = vadd.xlane.f32.xlu0 %v2239_v17  ;;  %v2988_v23 = vcombine.low %v6737_v58, %v2783_v14  ;;  %v2989_v24 = vcombine.high %v6737_v58, %v2783_v14 }
 0x7ca   :  { %v2795_v56 = vpop.permute.xlu1 %2794 }
 0x7dd   :  { %2768 = vrot.lane.b32.xlu0 %v6739_v29, %s6255_s21 }
 0x7e1   :  { %2792 = vrot.lane.b32.xlu0 %v6739_v29, %s6256_s22 }
 0x7e5   :  { %2772 = vrot.lane.b32.xlu0 %v6749_v33, %s6255_s21 }
 0x7e9   :  { %2784 = vrot.lane.b32.xlu0 %v6749_v33, %s6257_s23 }
 0x7ed   :  { %2796 = vrot.lane.b32.xlu0 %v6749_v33, %s6256_s22 }
 0x850   :  { %v2238_v34 = vpop.xlane.xlu0 %2237 }
 0x851   :  { %v2242_v55 = vmul.f32 0.032258064, %v2238_v34 }
 0x853   :  { %6173 = vrsqrt.f32 %v2242_v55  ;;  %vm2246_vm9 = vcmp.eq.f32.partialorder %v2242_v55, inf  ;;  %v2249_v40 = vand.u32 2147483648, %v2242_v55  ;;  %vm2248_vm10 = vcmp.eq.f32.partialorder %v2242_v55, 0.0 }
 0x854   :  { %v2241_v36 = vpop.xlane.xlu0 %2240 }
 0x855   :  { %v2243_v37 = vmul.f32 0.032258064, %v2241_v36  ;;  %v3003_v36 = vrot.slane %v2989_v24, %v6381_v8 }
 0x857   :  { %6175 = vrsqrt.f32 %v2243_v37  ;;  %vm2253_vm11 = vcmp.eq.f32.partialorder %v2243_v37, inf  ;;  %v2256_v51 = vand.u32 2147483648, %v2243_v37  ;;  %vm2255_vm12 = vcmp.eq.f32.partialorder %v2243_v37, 0.0 }
 0x858   :  { %v2769_v10 = vpop.permute.xlu0 %2768 }
 0x85c   :  { %v2793_v13 = vpop.permute.xlu0 %2792 }
 0x85d   :  { %v6174_v38 = vpop.eup %6173  ;;  %v2868_v19 = vcombine.low %v2769_v10, %v2793_v13  ;;  %v2869_v20 = vcombine.high %v2769_v10, %v2793_v13 }
 0x85e   :  { %v2245_v39 = vmul.f32 %v6174_v38, %v2242_v55  ;;  %v3005_v38 = vcombine.high %v2771_v9, %v2795_v56 }
 0x85f   :  { %v2876_v17 = vrot.slane %v2868_v19, %v6381_v8  ;;  %v2883_v22 = vrot.slane %v2869_v20, %v6381_v8 }
 0x860   :  { %v2247_v43 = vsel %vm2246_vm9, %v2242_v55, %v2245_v39  ;;  %v2773_v25 = vpop.permute.xlu0 %2772  ;;  %v2996_v55 = vrot.slane %v2988_v23, %v6381_v8 }
 0x861   :  { %v6176_v44 = vpop.eup %6175  ;;  %v2250_v47 = vsel %vm2248_vm10, %v2249_v40, %v2247_v43  ;;  %v2916_v26 = vcombine.low %v2860_v18, %v2876_v17  ;;  %v2917_v53 = vcombine.high %v2860_v18, %v2876_v17  ;;  %v2932_v54 = vcombine.low %v2867_v21, %v2883_v22 }
 0x862   :  { %v2252_v48 = vmul.f32 %v6176_v44, %v2243_v37  ;;  %v2258_v50 = vadd.f32 1e-06, %v2250_v47  ;;  %v2933_v27 = vcombine.high %v2867_v21, %v2883_v22 }
 0x863   :  { %v2924_v28 = vrot.slane %v2916_v26, %v6384_v15  ;;  %v2931_v31 = vrot.slane %v2917_v53, %v6384_v15  ;;  %v2940_v32 = vrot.slane %v2932_v54, %v6384_v15 }
 0x864   :  { %v2254_v59 = vsel %vm2253_vm11, %v2243_v37, %v2252_v48  ;;  %6177 = vrcp.f32 %v2258_v50  ;;  %v2947_v34 = vrot.slane %v2933_v27, %v6384_v15  ;;  %v3004_v37 = vcombine.low %v2771_v9, %v2795_v56  ;;  %v2785_v39 = vpop.permute.xlu0 %2784 }
 0x865   :  { %v2257_v60 = vsel %vm2255_vm12, %v2256_v51, %v2254_v59  ;;  %v5451_v40 = vcombine.low %v2924_v28, %v2931_v31  ;;  %v5453_v43 = vcombine.high %v2924_v28, %v2931_v31  ;;  %v3019_v50 = vrot.slane %v3005_v38, %v6381_v8 }
 0x866   :  { %v2259_v42 = vadd.f32 1e-06, %v2257_v60  ;;  %v5455_v44 = vcombine.low %v2940_v32, %v2947_v34  ;;  %v5457_v47 = vcombine.high %v2940_v32, %v2947_v34  ;;  %v3012_v48 = vrot.slane %v3004_v37, %v6381_v8 }
 0x867   :  { %v3124_v51 = vcombine.low %v6749_v33, %v2785_v39  ;;  %v3125_v59 = vcombine.high %v6749_v33, %v2785_v39  ;;  %v6797_v60 = vrot.slane %v5451_v40, %v6381_v8 }
 0x868   :  { %6179 = vrcp.f32 %v2259_v42  ;;  %v6800_v42 = vrot.slane %v5453_v43, %v6381_v8  ;;  %v6803_v35 = vrot.slane %v5455_v44, %v6381_v8  ;;  %v6806_v1 = vrot.slane %v5457_v47, %v6381_v8 }
 0x86a   :  { %v3460_v18 = vcombine.low %v6797_v60, %v6800_v42  ;;  %v3492_v21 = vcombine.low %v6803_v35, %v6806_v1 }
 0x86c   :  { %v3468_v47 = vrot.slane %v3460_v18, %v6384_v15 }
 0x86e   :  { %v6178_v49 = vpop.eup %6177 }
 0x86f   :  { %v2268_v4 = vmul.f32 %v6178_v49, %v2266_v2  ;;  %v2775_v2 = vpop.permute.xlu1 %2774  ;;  %v3053_v49 = vcombine.high %v2996_v55, %v3012_v48 }
 0x871   :  { %v2274_v61 = vadd.f32 %v2273_v3, %v2268_v4  ;;  %v3068_v4 = vcombine.low %v3003_v36, %v3019_v50  ;;  %v3067_v11 = vrot.slane %v3053_v49, %v6384_v15 }
 0x872   :  { %v6180_v63 = vpop.eup %6179 }
 0x873   :  { %v2269_v6 = vmul.f32 %v6180_v63, %v2267_v5  ;;  %5753 = vmatprep.mubr.msk.f32.mxu1 %vm39_vm0, %v2274_v61  ;;  %v3069_v5 = vcombine.high %v3003_v36, %v3019_v50  ;;  %v2797_v61 = vpop.permute.xlu0 %2796  ;;  %v3132_v63 = vrot.slane %v3124_v51, %v6381_v8  ;;  %v3076_v52 = vrot.slane %v3068_v4, %v6384_v15  ;;  %v2787_v13 = vpop.permute.xlu1 %2786 }
 0x874   :  { %v3141_v9 = vcombine.high %v2773_v25, %v2797_v61  ;;  %v3260_v24 = vcombine.low %v6755_v57, %v2787_v13 }
 0x875   :  { %v2275_v7 = vadd.f32 %v2273_v3, %v2269_v6  ;;  %v3052_v3 = vcombine.low %v2996_v55, %v3012_v48  ;;  %v3139_v6 = vrot.slane %v3125_v59, %v6381_v8  ;;  %v3083_v12 = vrot.slane %v3069_v5, %v6384_v15 }
 0x876   :  { %v3155_v20 = vrot.slane %v3141_v9, %v6381_v8  ;;  %v3268_v31 = vrot.slane %v3260_v24, %v6381_v8  ;;  %v3500_v48 = vrot.slane %v3492_v21, %v6384_v15 }
 0x877   :  { %5754 = vmatmul.mubr.msk.f32.vlgmr.msra.gmra.mrb[6].mxu1 %vm39_vm0, %v2275_v7  ;;  %v3140_v7 = vcombine.low %v2773_v25, %v2797_v61  ;;  %v3060_v10 = vrot.slane %v3052_v3, %v6384_v15  ;;  %v5463_v22 = vcombine.low %v3076_v52, %v3083_v12  ;;  %v5465_v23 = vcombine.high %v3076_v52, %v3083_v12  ;;  %v2799_v34 = vpop.permute.xlu1 %2798 }
 0x878   :  { %v3261_v25 = vcombine.high %v6755_v57, %v2787_v13  ;;  %v3276_v37 = vcombine.low %v2775_v2, %v2799_v34  ;;  %v3277_v38 = vcombine.high %v2775_v2, %v2799_v34  ;;  %v3204_v39 = vcombine.low %v3139_v6, %v3155_v20 }
 0x879   :  { %v3148_v19 = vrot.slane %v3140_v7, %v6381_v8  ;;  %v5459_v14 = vcombine.low %v3060_v10, %v3067_v11  ;;  %v5461_v17 = vcombine.high %v3060_v10, %v3067_v11  ;;  %v6829_v56 = vrot.slane %v5463_v22, %v6381_v8 }
 0x87a   :  { %v6832_v28 = vrot.slane %v5465_v23, %v6381_v8  ;;  %v3275_v32 = vrot.slane %v3261_v25, %v6381_v8  ;;  %v3205_v40 = vcombine.high %v3139_v6, %v3155_v20  ;;  %v3284_v50 = vrot.slane %v3276_v37, %v6381_v8 }
 0x87b   :  { %v3188_v26 = vcombine.low %v3132_v63, %v3148_v19  ;;  %v3189_v53 = vcombine.high %v3132_v63, %v3148_v19  ;;  %v6823_v54 = vrot.slane %v5459_v14, %v6381_v8  ;;  %v6826_v27 = vrot.slane %v5461_v17, %v6381_v8 }
 0x87c   :  { %v3291_v51 = vrot.slane %v3277_v38, %v6381_v8  ;;  %v3212_v59 = vrot.slane %v3204_v39, %v6384_v15  ;;  %v3219_v3 = vrot.slane %v3205_v40, %v6384_v15  ;;  %v3524_v4 = vcombine.low %v3468_v47, %v3500_v48 }
 0x87d   :  { %v3196_v55 = vrot.slane %v3188_v26, %v6384_v15  ;;  %v3203_v36 = vrot.slane %v3189_v53, %v6384_v15  ;;  %v3596_v5 = vcombine.low %v6823_v54, %v6826_v27  ;;  %v3324_v61 = vcombine.low %v3268_v31, %v3284_v50 }
 0x87e   :  { %v3325_v63 = vcombine.high %v3268_v31, %v3284_v50  ;;  %v3340_v6 = vcombine.low %v3275_v32, %v3291_v51  ;;  %v3341_v7 = vcombine.high %v3275_v32, %v3291_v51  ;;  %v5471_v9 = vcombine.low %v3212_v59, %v3219_v3 }
 0x87f   :  { %v5467_v43 = vcombine.low %v3196_v55, %v3203_v36  ;;  %v5469_v44 = vcombine.high %v3196_v55, %v3203_v36  ;;  %v5473_v10 = vcombine.high %v3212_v59, %v3219_v3  ;;  %v3604_v11 = vrot.slane %v3596_v5, %v6384_v15 }
 0x880   :  { %v3628_v52 = vcombine.low %v6829_v56, %v6832_v28  ;;  %v3332_v12 = vrot.slane %v3324_v61, %v6384_v15  ;;  %v3339_v13 = vrot.slane %v3325_v63, %v6384_v15  ;;  %v3348_v19 = vrot.slane %v3340_v6, %v6384_v15 }
 0x881   :  { %v6845_v49 = vrot.slane %v5467_v43, %v6381_v8  ;;  %v6848_v2 = vrot.slane %v5469_v44, %v6381_v8  ;;  %v3355_v20 = vrot.slane %v3341_v7, %v6384_v15  ;;  %v3708_v18 = vrot.slane %v5471_v9, %v6381_v8 }
 0x882   :  { %v3724_v21 = vrot.slane %v5473_v10, %v6381_v8  ;;  %v3636_v14 = vrot.slane %v3628_v52, %v6384_v15  ;;  %v3525_v17 = vcombine.high %v3468_v47, %v3500_v48  ;;  %v5475_v22 = vcombine.low %v3332_v12, %v3339_v13 }
 0x883   :  { %v5477_v23 = vcombine.high %v3332_v12, %v3339_v13  ;;  %v5479_v24 = vcombine.low %v3348_v19, %v3355_v20  ;;  %v5481_v25 = vcombine.high %v3348_v19, %v3355_v20  ;;  %v3732_v31 = vcombine.low %v6845_v49, %v6848_v2 }
 0x884   :  { %v3660_v26 = vcombine.low %v3604_v11, %v3636_v14  ;;  %v3661_v53 = vcombine.high %v3604_v11, %v3636_v14  ;;  %v3764_v32 = vcombine.low %v3708_v18, %v3724_v21  ;;  %v3812_v34 = vrot.slane %v5475_v22, %v6381_v8 }
 0x885   :  { %v3828_v55 = vrot.slane %v5477_v23, %v6381_v8  ;;  %v3844_v36 = vrot.slane %v5479_v24, %v6381_v8  ;;  %v3860_v37 = vrot.slane %v5481_v25, %v6381_v8  ;;  %v3740_v40 = vrot.slane %v3732_v31, %v6384_v15 }
 0x886   :  { %v5987_v38 = vpack.c.bf16 %v3660_v26, %v3524_v4  ;;  %v5999_v39 = vpack.c.bf16 %v3661_v53, %v3525_v17  ;;  %v3772_v43 = vrot.slane %v3764_v32, %v6384_v15  ;;  %v3461_v48 = vcombine.high %v6797_v60, %v6800_v42 }
 0x887   :  { %v3868_v44 = vcombine.low %v3812_v34, %v3828_v55  ;;  %v3900_v47 = vcombine.low %v3844_v36, %v3860_v37  ;;  %v3493_v50 = vcombine.high %v6803_v35, %v6806_v1  ;;  %v3597_v3 = vcombine.high %v6823_v54, %v6826_v27 }
 0x888   :  { %5989 = vmatprep.subr.msk.bf16.mxu1 %vm6462_vm6, %v5987_v38  ;;  %6001 = vmatprep.subr.msk.bf16.mxu0 %vm6462_vm6, %v5999_v39  ;;  %v3796_v51 = vcombine.low %v3740_v40, %v3772_v43  ;;  %v3797_v59 = vcombine.high %v3740_v40, %v3772_v43  ;;  %v3475_v35 = vrot.slane %v3461_v48, %v6384_v15 }
 0x889   :  { %5992 = vmatpush3.bf16.xpose.msk.msra.mxu1 %vm6462_vm6, %v5987_v38  ;;  %6004 = vmatpush3.bf16.xpose.msk.msra.mxu0 %vm6462_vm6, %v5999_v39  ;;  %v3876_v60 = vrot.slane %v3868_v44, %v6384_v15  ;;  %v3908_v42 = vrot.slane %v3900_v47, %v6384_v15  ;;  %v3507_v1 = vrot.slane %v3493_v50, %v6384_v15 }
 0x88a   :  { %v3611_v4 = vrot.slane %v3597_v3, %v6384_v15  ;;  %v3629_v5 = vcombine.high %v6829_v56, %v6832_v28  ;;  %v3733_v56 = vcombine.high %v6845_v49, %v6848_v2  ;;  %v3765_v28 = vcombine.high %v3708_v18, %v3724_v21 }
 0x88b   :  { %v3932_v54 = vcombine.low %v3876_v60, %v3908_v42  ;;  %v3933_v27 = vcombine.high %v3876_v60, %v3908_v42  ;;  %v3526_v61 = vcombine.low %v3475_v35, %v3507_v1  ;;  %v3527_v6 = vcombine.high %v3475_v35, %v3507_v1 }
 0x88c   :  { %v3643_v63 = vrot.slane %v3629_v5, %v6384_v15  ;;  %v3869_v13 = vcombine.high %v3812_v34, %v3828_v55  ;;  %v3901_v19 = vcombine.high %v3844_v36, %v3860_v37  ;;  %v3747_v20 = vrot.slane %v3733_v56, %v6384_v15 }
 0x88d   :  { %v5993_v7 = vpack.c.bf16 %v3932_v54, %v3796_v51  ;;  %v6005_v9 = vpack.c.bf16 %v3933_v27, %v3797_v59  ;;  %v3779_v14 = vrot.slane %v3765_v28, %v6384_v15  ;;  %v2284_v49 = vrot.slane %v6664_v46, %v90_v41 }
 0x88e   :  { %v3662_v10 = vcombine.low %v3611_v4, %v3643_v63  ;;  %v3663_v11 = vcombine.high %v3611_v4, %v3643_v63  ;;  %v3883_v17 = vrot.slane %v3869_v13, %v6384_v15  ;;  %v3915_v22 = vrot.slane %v3901_v19, %v6384_v15 }
 0x88f   :  { %5995 = vmatprep.subr.msk.bf16.mxu1 %vm6462_vm6, %v5993_v7  ;;  %6007 = vmatprep.subr.msk.bf16.mxu0 %vm6462_vm6, %v6005_v9  ;;  %v3798_v23 = vcombine.low %v3747_v20, %v3779_v14  ;;  %v3799_v25 = vcombine.high %v3747_v20, %v3779_v14 }
 0x890   :  { %v6896_v52 = vpack.c.bf16 %v3662_v10, %v3526_v61  ;;  %v6898_v12 = vpack.c.bf16 %v3663_v11, %v3527_v6  ;;  %v3934_v24 = vcombine.low %v3883_v17, %v3915_v22  ;;  %v3935_v26 = vcombine.high %v3883_v17, %v3915_v22 }
 0x891   :  { %5998 = vmatpush3.bf16.xpose.msk.msra.mxu1 %vm6462_vm6, %v5993_v7  ;;  %6010 = vmatpush3.bf16.xpose.msk.msra.mxu0 %vm6462_vm6, %v6005_v9 }
 0x892   :  { %6013 = vmatprep.subr.msk.bf16.mxu1 %vm6462_vm6, %v6896_v52  ;;  %6025 = vmatprep.subr.msk.bf16.mxu0 %vm6462_vm6, %v6898_v12  ;;  %v6916_v53 = vpack.c.bf16 %v3934_v24, %v3798_v23  ;;  %v6918_v31 = vpack.c.bf16 %v3935_v26, %v3799_v25 }
 0x94a   :  { %v5755_v2 = vpop.f32.mrb[6].mxu1 }
 0x94b   :  { %v2363_v18 = vadd.f32 %v5755_v2, %v2284_v49  ;;  %v2357_v21 = vpop.f32.mrb[7].mxu1 }
 0x94c   :  { %v2358_v32 = vadd.f32 %v2357_v21, %v2284_v49 }
 0x94d   :  { %2476 = vrot.lane.b32.xlu1 %v2363_v18, %s6255_s21 }
 0x94e   :  { %2474 = vrot.lane.b32.xlu0 %v2358_v32, %s6255_s21 }
 0x951   :  { %2480 = vrot.lane.b32.xlu1 %v2358_v32, %s6257_s23 }
 0x952   :  { %2486 = vrot.lane.b32.xlu0 %v2358_v32, %s6256_s22 }
 0x955   :  { %2488 = vrot.lane.b32.xlu1 %v2363_v18, %s6256_s22 }
 0x956   :  { %2482 = vrot.lane.b32.xlu0 %v2363_v18, %s6257_s23 }
 0x959   :  { %2806 = vrot.lane.b32.xlu1 %v6737_v58, %s6251_s17 }
 0x95a   :  { %2804 = vrot.lane.b32.xlu0 %v6739_v29, %s6251_s17 }
 0x95d   :  { %2816 = vrot.lane.b32.xlu1 %v6739_v29, %s6252_s18 }
 0x961   :  { %2818 = vrot.lane.b32.xlu1 %v6737_v58, %s6252_s18 }
 0x9bf   :  { %v2477_v41 = vpop.permute.xlu1 %2476 }
 0x9c0   :  { %v2475_v46 = vpop.permute.xlu0 %2474 }
 0x9c3   :  { %v2481_v34 = vpop.permute.xlu1 %2480 }
 0x9c4   :  { %v2492_v55 = vcombine.low %v2358_v32, %v2481_v34  ;;  %v2493_v36 = vcombine.high %v2358_v32, %v2481_v34  ;;  %v2487_v37 = vpop.permute.xlu0 %2486 }
 0x9c5   :  { %v2508_v38 = vcombine.low %v2475_v46, %v2487_v37  ;;  %v2509_v39 = vcombine.high %v2475_v46, %v2487_v37 }
 0x9c6   :  { %v2500_v40 = vrot.slane %v2492_v55, %v6381_v8  ;;  %v2507_v43 = vrot.slane %v2493_v36, %v6381_v8 }
 0x9c7   :  { %v2516_v44 = vrot.slane %v2508_v38, %v6381_v8  ;;  %v2523_v47 = vrot.slane %v2509_v39, %v6381_v8  ;;  %v2489_v48 = vpop.permute.xlu1 %2488 }
 0x9c8   :  { %v2576_v50 = vcombine.low %v2477_v41, %v2489_v48  ;;  %v2577_v51 = vcombine.high %v2477_v41, %v2489_v48  ;;  %v2483_v59 = vpop.permute.xlu0 %2482 }
 0x9c9   :  { %v2524_v3 = vcombine.low %v2500_v40, %v2516_v44  ;;  %v2525_v60 = vcombine.high %v2500_v40, %v2516_v44  ;;  %v2540_v42 = vcombine.low %v2507_v43, %v2523_v47  ;;  %v2541_v35 = vcombine.high %v2507_v43, %v2523_v47 }
 0x9ca   :  { %v2584_v1 = vrot.slane %v2576_v50, %v6381_v8  ;;  %v2591_v4 = vrot.slane %v2577_v51, %v6381_v8  ;;  %v2560_v5 = vcombine.low %v2363_v18, %v2483_v59  ;;  %v2561_v54 = vcombine.high %v2363_v18, %v2483_v59 }
 0x9cb   :  { %v2532_v27 = vrot.slane %v2524_v3, %v6384_v15  ;;  %v2539_v61 = vrot.slane %v2525_v60, %v6384_v15  ;;  %v2548_v63 = vrot.slane %v2540_v42, %v6384_v15  ;;  %v2555_v6 = vrot.slane %v2541_v35, %v6384_v15 }
 0x9cc   :  { %v2568_v7 = vrot.slane %v2560_v5, %v6381_v8  ;;  %v2575_v9 = vrot.slane %v2561_v54, %v6381_v8 }
 0x9cd   :  { %v2628_v10 = vcombine.low %v2532_v27, %v2539_v61  ;;  %v5447_v11 = vcombine.high %v2532_v27, %v2539_v61  ;;  %v2644_v56 = vcombine.low %v2548_v63, %v2555_v6  ;;  %v5448_v28 = vcombine.high %v2548_v63, %v2555_v6  ;;  %v36_v6 = vld [vmem:[%s7357_s3 + $0x8] sm:$0xff] }
 0x9ce   :  { %v2592_v13 = vcombine.low %v2568_v7, %v2584_v1  ;;  %v2593_v19 = vcombine.high %v2568_v7, %v2584_v1  ;;  %v2608_v20 = vcombine.low %v2575_v9, %v2591_v4  ;;  %v2609_v14 = vcombine.high %v2575_v9, %v2591_v4 }
 0x9cf   :  { %v2635_v17 = vrot.slane %v2628_v10, %v6381_v8  ;;  %v2643_v22 = vrot.slane %v5447_v11, %v6381_v8  ;;  %v2651_v23 = vrot.slane %v2644_v56, %v6381_v8  ;;  %v2659_v24 = vrot.slane %v5448_v28, %v6381_v8 }
 0x9d0   :  { %v2600_v25 = vrot.slane %v2592_v13, %v6384_v15  ;;  %v2607_v26 = vrot.slane %v2593_v19, %v6384_v15  ;;  %v2616_v49 = vrot.slane %v2608_v20, %v6384_v15  ;;  %v2623_v2 = vrot.slane %v2609_v14, %v6384_v15 }
 0x9d1   :  { %v2660_v18 = vcombine.low %v2635_v17, %v2643_v22  ;;  %v2676_v21 = vcombine.low %v2651_v23, %v2659_v24  ;;  %v2661_v37 = vcombine.high %v2635_v17, %v2643_v22  ;;  %v2677_v38 = vcombine.high %v2651_v23, %v2659_v24 }
 0x9d2   :  { %v2696_v32 = vcombine.low %v2600_v25, %v2607_v26  ;;  %v5449_v41 = vcombine.high %v2600_v25, %v2607_v26  ;;  %v2712_v46 = vcombine.low %v2616_v49, %v2623_v2  ;;  %v5450_v34 = vcombine.high %v2616_v49, %v2623_v2 }
 0x9d3   :  { %v2668_v55 = vrot.slane %v2660_v18, %v6384_v15  ;;  %v2684_v36 = vrot.slane %v2676_v21, %v6384_v15  ;;  %v2675_v60 = vrot.slane %v2661_v37, %v6384_v15  ;;  %v2691_v42 = vrot.slane %v2677_v38, %v6384_v15 }
 0x9d4   :  { %v2703_v39 = vrot.slane %v2696_v32, %v6381_v8  ;;  %v2711_v40 = vrot.slane %v5449_v41, %v6381_v8  ;;  %v2719_v43 = vrot.slane %v2712_v46, %v6381_v8  ;;  %v2727_v44 = vrot.slane %v5450_v34, %v6381_v8  ;;  %v7042_v46 = vpop.permute.xlu0 %2804 }
 0x9d5   :  { %v2692_v47 = vcombine.low %v2668_v55, %v2684_v36  ;;  %v2693_v48 = vcombine.high %v2668_v55, %v2684_v36  ;;  %v2694_v4 = vcombine.low %v2675_v60, %v2691_v42  ;;  %v2695_v5 = vcombine.high %v2675_v60, %v2691_v42 }
 0x9d6   :  { %v2728_v50 = vcombine.low %v2703_v39, %v2711_v40  ;;  %v2744_v51 = vcombine.low %v2719_v43, %v2727_v44  ;;  %v2729_v54 = vcombine.high %v2703_v39, %v2711_v40  ;;  %v2745_v27 = vcombine.high %v2719_v43, %v2727_v44 }
 0x9d7   :  { %5778 = vmatprep.mubr.msk.f32.mxu1 %vm1067_vm5, %v2692_v47  ;;  %5789 = vmatprep.mubr.msk.f32.mxu0 %vm1067_vm5, %v2693_v48 }
 0x9d8   :  { %v2736_v59 = vrot.slane %v2728_v50, %v6384_v15  ;;  %v2752_v3 = vrot.slane %v2744_v51, %v6384_v15 }
 0x9da   :  { %v2760_v35 = vcombine.low %v2736_v59, %v2752_v3  ;;  %v2761_v1 = vcombine.high %v2736_v59, %v2752_v3 }
 0x9dc   :  { %5779 = vmatmul.mubr.msk.f32.vlgmr.msra.gmra.mrb[8].mxu1 %vm1067_vm5, %v2760_v35  ;;  %5790 = vmatmul.mubr.msk.f32.vlgmr.msra.gmra.mrb[18].mxu0 %vm1067_vm5, %v2761_v1 }
 0x9dd   :  { %6016 = vmatpush3.bf16.xpose.msk.msra.mxu1 %vm6462_vm6, %v6896_v52  ;;  %6028 = vmatpush3.bf16.xpose.msk.msra.mxu0 %vm6462_vm6, %v6898_v12  ;;  %v2743_v52 = vrot.slane %v2729_v54, %v6384_v15  ;;  %v2759_v12 = vrot.slane %v2745_v27, %v6384_v15 }
 0x9de   :  { %6019 = vmatprep.subr.msk.bf16.mxu1 %vm6462_vm6, %v6916_v53  ;;  %5800 = vmatprep.mubr.msk.f32.mxu1 %vm1067_vm5, %v2694_v4 }
 0x9df   :  { %6031 = vmatprep.subr.msk.bf16.mxu0 %vm6462_vm6, %v6918_v31  ;;  %5811 = vmatprep.mubr.msk.f32.mxu0 %vm1067_vm5, %v2695_v5  ;;  %v2762_v61 = vcombine.low %v2743_v52, %v2759_v12  ;;  %v2763_v63 = vcombine.high %v2743_v52, %v2759_v12 }
 0x9e5   :  { %6022 = vmatpush3.bf16.xpose.msk.msra.mxu1 %vm6462_vm6, %v6916_v53  ;;  %6034 = vmatpush3.bf16.xpose.msk.msra.mxu0 %vm6462_vm6, %v6918_v31  ;;  %v35_v53 = vld [vmem:[%s7357_s3] sm:$0xff] }
 0x9ec   :  { %5801 = vmatmul.mubr.msk.f32.vlgmr.msra.gmra.mrb[10].mxu1 %vm1067_vm5, %v2762_v61  ;;  %5812 = vmatmul.mubr.msk.f32.vlgmr.msra.gmra.mrb[20].mxu0 %vm1067_vm5, %v2763_v63 }
 0xaaf   :  { %v5780_v16 = vpop.f32.mrb[8].mxu1  ;;  %v5791_v31 = vpop.f32.mrb[18].mxu0 }
 0xab0   :  { %v4030_v7 = vadd.f32 %v5780_v16, %v36_v6  ;;  %v4024_v9 = vpop.f32.mrb[9].mxu1  ;;  %v4117_v10 = vpop.f32.mrb[19].mxu0  ;;  %v4123_v56 = vadd.f32 %v5791_v31, %v36_v6 }
 0xab1   :  { %v4118_v11 = vadd.f32 %v4117_v10, %v35_v53  ;;  %v4025_v19 = vadd.f32 %v4024_v9, %v35_v53 }
 0xab2   :  { %v4315_v28 = vsel %vm39_vm0, %v4030_v7, -inf  ;;  %v4321_v20 = vsel %vm39_vm0, %v4123_v56, -inf }
 0xab3   :  { %4316 = vmax.xlane.f32.xlu0 %v4315_v28  ;;  %v4318_v13 = vsel %vm39_vm0, %v4118_v11, -inf  ;;  %v4312_v14 = vsel %vm39_vm0, %v4025_v19, -inf }
 0xab4   :  { %4319 = vmax.xlane.f32.xlu1 %v4318_v13 }
 0xab7   :  { %4322 = vmax.xlane.f32.xlu0 %v4321_v20 }
 0xabb   :  { %4313 = vmax.xlane.f32.xlu0 %v4312_v14 }
 0xabf   :  { %v5802_v17 = vpop.f32.mrb[10].mxu1  ;;  %v5813_v22 = vpop.f32.mrb[20].mxu0 }
 0xac0   :  { %v7005_v23 = vadd.f32 %v5802_v17, %v36_v6  ;;  %v7007_v24 = vadd.f32 %v5813_v22, %v36_v6  ;;  %v4210_v25 = vpop.f32.mrb[11].mxu1  ;;  %v4303_v26 = vpop.f32.mrb[21].mxu0 }
 0xac1   :  { %v7009_v49 = vadd.f32 %v4303_v26, %v35_v53  ;;  %v4211_v2 = vadd.f32 %v4210_v25, %v35_v53 }
 0xac2   :  { %v4333_v18 = vsel %vm39_vm0, %v7007_v24, -inf  ;;  %v4327_v21 = vsel %vm39_vm0, %v7005_v23, -inf }
 0xac3   :  { %4334 = vmax.xlane.f32.xlu1 %v4333_v18  ;;  %4328 = vmax.xlane.f32.xlu0 %v4327_v21  ;;  %v4324_v32 = vsel %vm39_vm0, %v4211_v2, -inf }
 0xac7   :  { %4325 = vmax.xlane.f32.xlu0 %v4324_v32 }
 0xad4   :  { %2830 = vrot.lane.b32.xlu1 %v6737_v58, %s6253_s19 }
 0xad8   :  { %2842 = vrot.lane.b32.xlu1 %v6737_v58, %s6254_s20  ;;  %v4330_v58 = vsel %vm39_vm0, %v7009_v49, -inf }
 0xadc   :  { %2810 = vrot.lane.b32.xlu1 %v6755_v57, %s6251_s17 }
 0xadd   :  { %2828 = vrot.lane.b32.xlu0 %v6739_v29, %s6253_s19 }
 0xae0   :  { %2820 = vrot.lane.b32.xlu1 %v6749_v33, %s6252_s18 }
 0xae1   :  { %2840 = vrot.lane.b32.xlu0 %v6739_v29, %s6254_s20  ;;  %v2807_v29 = vpop.permute.xlu1 %2806 }
 0xae4   :  { %2822 = vrot.lane.b32.xlu1 %v6755_v57, %s6252_s18 }
 0xae5   :  { %2808 = vrot.lane.b32.xlu0 %v6749_v33, %s6251_s17  ;;  %v7040_v41 = vpop.permute.xlu1 %2816 }
 0xae9   :  { %2832 = vrot.lane.b32.xlu0 %v6749_v33, %s6253_s19  ;;  %v2819_v34 = vpop.permute.xlu1 %2818 }
 0xaed   :  { %2844 = vrot.lane.b32.xlu0 %v6749_v33, %s6254_s20 }
 0xb08   :  { %4331 = vmax.xlane.f32.xlu1 %v4330_v58 }
 0xb19   :  { %2834 = vrot.lane.b32.xlu1 %v6755_v57, %s6253_s19 }
 0xb40   :  { %v4317_v55 = vpop.xlane.xlu0 %4316 }
 0xb41   :  { %v4337_v36 = vsub.f32 %v4030_v7, %v4317_v55  ;;  %v4320_v37 = vpop.xlane.xlu1 %4319 }
 0xb42   :  { %v4338_v38 = vsub.f32 %v4118_v11, %v4320_v37 }
 0xb43   :  { %v4346_v39 = vmul.f32 1.442695, %v4337_v36 }
 0xb44   :  { %v4348_v40 = vmul.f32 1.442695, %v4338_v38  ;;  %v4323_v33 = vpop.xlane.xlu0 %4322 }
 0xb45   :  { %6181 = vpow2.f32 %v4346_v39  ;;  %v4339_v43 = vsub.f32 %v4123_v56, %v4323_v33 }
 0xb46   :  { %6183 = vpow2.f32 %v4348_v40 }
 0xb47   :  { %v4350_v44 = vmul.f32 1.442695, %v4339_v43 }
 0xb48   :  { %v4314_v47 = vpop.xlane.xlu0 %4313 }
 0xb49   :  { %6185 = vpow2.f32 %v4350_v44  ;;  %v4336_v48 = vsub.f32 %v4025_v19, %v4314_v47 }
 0xb4b   :  { %v4344_v50 = vmul.f32 1.442695, %v4336_v48 }
 0xb4d   :  { %6187 = vpow2.f32 %v4344_v50 }
 0xb4f   :  { %v7044_v51 = vpop.eup %6181 }
 0xb50   :  { %v7046_v59 = vpop.eup %6183  ;;  %v4335_v3 = vpop.xlane.xlu1 %4334  ;;  %v4363_v42 = vsel %vm39_vm0, %v7044_v51, 0.0 }
 0xb51   :  { %v4329_v60 = vpop.xlane.xlu0 %4328  ;;  %4364 = vadd.xlane.f32.xlu0 %v4363_v42  ;;  %v4366_v35 = vsel %vm39_vm0, %v7046_v59, 0.0  ;;  %v4343_v12 = vsub.f32 %v7007_v24, %v4335_v3 }
 0xb52   :  { %4367 = vadd.xlane.f32.xlu1 %v4366_v35  ;;  %v4341_v4 = vsub.f32 %v7005_v23, %v4329_v60 }
 0xb53   :  { %v7052_v1 = vpop.eup %6185  ;;  %v4358_v56 = vmul.f32 1.442695, %v4343_v12 }
 0xb54   :  { %v2831_v5 = vpop.permute.xlu1 %2830  ;;  %v4369_v27 = vsel %vm39_vm0, %v7052_v1, 0.0  ;;  %v4354_v16 = vmul.f32 1.442695, %v4341_v4 }
 0xb55   :  { %v4326_v54 = vpop.xlane.xlu0 %4325  ;;  %4370 = vadd.xlane.f32.xlu0 %v4369_v27  ;;  %v3020_v63 = vcombine.low %v2807_v29, %v2831_v5  ;;  %v3021_v6 = vcombine.high %v2807_v29, %v2831_v5 }
 0xb56   :  { %v4340_v52 = vsub.f32 %v4211_v2, %v4326_v54 }
 0xb57   :  { %v7058_v61 = vpop.eup %6187  ;;  %v3028_v28 = vrot.slane %v3020_v63, %v6381_v8  ;;  %v3035_v13 = vrot.slane %v3021_v6, %v6381_v8 }
 0xb58   :  { %v4352_v53 = vmul.f32 1.442695, %v4340_v52  ;;  %v2843_v31 = vpop.permute.xlu1 %2842  ;;  %v4360_v9 = vsel %vm39_vm0, %v7058_v61, 0.0 }
 0xb59   :  { %v2829_v7 = vpop.permute.xlu0 %2828  ;;  %v3036_v10 = vcombine.low %v2819_v34, %v2843_v31  ;;  %v3037_v11 = vcombine.high %v2819_v34, %v2843_v31  ;;  %4361 = vadd.xlane.f32.xlu0 %v4360_v9 }
 0xb5a   :  { %6189 = vpow2.f32 %v4352_v53  ;;  %v2884_v14 = vcombine.low %v7042_v46, %v2829_v7  ;;  %v2885_v17 = vcombine.high %v7042_v46, %v2829_v7 }
 0xb5b   :  { %v3044_v19 = vrot.slane %v3036_v10, %v6381_v8  ;;  %v3051_v20 = vrot.slane %v3037_v11, %v6381_v8  ;;  %6191 = vpow2.f32 %v4354_v16 }
 0xb5c   :  { %6193 = vpow2.f32 %v4358_v56  ;;  %v2892_v46 = vrot.slane %v2884_v14, %v6381_v8  ;;  %v2899_v34 = vrot.slane %v2885_v17, %v6381_v8 }
 0xb5d   :  { %v2841_v22 = vpop.permute.xlu0 %2840  ;;  %v3084_v23 = vcombine.low %v3028_v28, %v3044_v19  ;;  %v3085_v24 = vcombine.high %v3028_v28, %v3044_v19  ;;  %v3100_v25 = vcombine.low %v3035_v13, %v3051_v20  ;;  %v3101_v26 = vcombine.high %v3035_v13, %v3051_v20 }
 0xb5e   :  { %v2900_v2 = vcombine.low %v7040_v41, %v2841_v22  ;;  %v2901_v18 = vcombine.high %v7040_v41, %v2841_v22 }
 0xb5f   :  { %v3092_v21 = vrot.slane %v3084_v23, %v6384_v15  ;;  %v3099_v32 = vrot.slane %v3085_v24, %v6384_v15  ;;  %v3108_v58 = vrot.slane %v3100_v25, %v6384_v15  ;;  %v3115_v29 = vrot.slane %v3101_v26, %v6384_v15 }
 0xb60   :  { %v2908_v55 = vrot.slane %v2900_v2, %v6381_v8  ;;  %v2915_v36 = vrot.slane %v2901_v18, %v6381_v8 }
 0xb61   :  { %v5460_v37 = vcombine.low %v3092_v21, %v3099_v32  ;;  %v5462_v38 = vcombine.high %v3092_v21, %v3099_v32  ;;  %v5464_v39 = vcombine.low %v3108_v58, %v3115_v29  ;;  %v5466_v41 = vcombine.high %v3108_v58, %v3115_v29 }
 0xb62   :  { %v2948_v40 = vcombine.low %v2892_v46, %v2908_v55  ;;  %v2949_v33 = vcombine.high %v2892_v46, %v2908_v55  ;;  %v2964_v43 = vcombine.low %v2899_v34, %v2915_v36  ;;  %v2965_v44 = vcombine.high %v2899_v34, %v2915_v36 }
 0xb63   :  { %v3547_v48 = vrot.slane %v5460_v37, %v6381_v8  ;;  %v3563_v50 = vrot.slane %v5462_v38, %v6381_v8  ;;  %v3579_v3 = vrot.slane %v5464_v39, %v6381_v8  ;;  %v3595_v60 = vrot.slane %v5466_v41, %v6381_v8  ;;  %2846 = vrot.lane.b32.xlu1 %v6755_v57, %s6254_s20 }
 0xb64   :  { %v7078_v47 = vpop.eup %6189  ;;  %v2956_v42 = vrot.slane %v2948_v40, %v6384_v15  ;;  %v2963_v35 = vrot.slane %v2949_v33, %v6384_v15  ;;  %v2972_v4 = vrot.slane %v2964_v43, %v6384_v15  ;;  %v2979_v5 = vrot.slane %v2965_v44, %v6384_v15  ;;  %v2811_v33 = vpop.permute.xlu1 %2810 }
 0xb65   :  { %v4372_v54 = vsel %vm39_vm0, %v7078_v47, 0.0  ;;  %v7092_v27 = vpop.eup %6191  ;;  %v3612_v53 = vcombine.low %v3547_v48, %v3563_v50  ;;  %v3644_v57 = vcombine.low %v3579_v3, %v3595_v60  ;;  %v3613_v58 = vcombine.high %v3547_v48, %v3563_v50 }
 0xb66   :  { %v5452_v52 = vcombine.low %v2956_v42, %v2963_v35  ;;  %v5454_v12 = vcombine.high %v2956_v42, %v2963_v35  ;;  %v5456_v63 = vcombine.low %v2972_v4, %v2979_v5  ;;  %v5458_v6 = vcombine.high %v2972_v4, %v2979_v5  ;;  %4373 = vadd.xlane.f32.xlu0 %v4372_v54  ;;  %v7094_v16 = vpop.eup %6193  ;;  %v2809_v35 = vpop.permute.xlu0 %2808 }
 0xb67   :  { %v4375_v11 = vsel %vm39_vm0, %v7092_v27, 0.0  ;;  %v3620_v56 = vrot.slane %v3612_v53, %v6384_v15  ;;  %v3652_v28 = vrot.slane %v3644_v57, %v6384_v15  ;;  %v4381_v25 = vsel %vm39_vm0, %v7094_v16, 0.0 }
 0xb68   :  { %v3411_v31 = vrot.slane %v5452_v52, %v6381_v8  ;;  %v3427_v7 = vrot.slane %v5454_v12, %v6381_v8  ;;  %v3443_v9 = vrot.slane %v5456_v63, %v6381_v8  ;;  %v3459_v10 = vrot.slane %v5458_v6, %v6381_v8  ;;  %v2821_v43 = vpop.permute.xlu1 %2820 }
 0xb69   :  { %v3664_v26 = vcombine.low %v3620_v56, %v3652_v28  ;;  %v3665_v2 = vcombine.high %v3620_v56, %v3652_v28  ;;  %v3627_v34 = vrot.slane %v3613_v58, %v6384_v15  ;;  %v3645_v55 = vcombine.high %v3579_v3, %v3595_v60 }
 0xb6a   :  { %4376 = vadd.xlane.f32.xlu0 %v4375_v11  ;;  %v3476_v13 = vcombine.low %v3411_v31, %v3427_v7  ;;  %v3508_v19 = vcombine.low %v3443_v9, %v3459_v10  ;;  %v3477_v20 = vcombine.high %v3411_v31, %v3427_v7  ;;  %v3509_v14 = vcombine.high %v3443_v9, %v3459_v10  ;;  %v2833_v4 = vpop.permute.xlu0 %2832 }
 0xb6b   :  { %v3659_v36 = vrot.slane %v3645_v55, %v6384_v15  ;;  %v3156_v52 = vcombine.low %v2809_v35, %v2833_v4  ;;  %v3157_v63 = vcombine.high %v2809_v35, %v2833_v4 }
 0xb6c   :  { %v3484_v17 = vrot.slane %v3476_v13, %v6384_v15  ;;  %v3516_v22 = vrot.slane %v3508_v19, %v6384_v15  ;;  %v3491_v23 = vrot.slane %v3477_v20, %v6384_v15  ;;  %v3523_v24 = vrot.slane %v3509_v14, %v6384_v15  ;;  %v2823_v44 = vpop.permute.xlu1 %2822 }
 0xb6d   :  { %v3666_v38 = vcombine.low %v3627_v34, %v3659_v36  ;;  %v3667_v39 = vcombine.high %v3627_v34, %v3659_v36  ;;  %v3164_v53 = vrot.slane %v3156_v52, %v6381_v8  ;;  %v3171_v57 = vrot.slane %v3157_v63, %v6381_v8 }
 0xb6e   :  { %4382 = vadd.xlane.f32.xlu0 %v4381_v25  ;;  %v3528_v18 = vcombine.low %v3484_v17, %v3516_v22  ;;  %v3529_v21 = vcombine.high %v3484_v17, %v3516_v22  ;;  %v3530_v32 = vcombine.low %v3491_v23, %v3523_v24  ;;  %v3531_v37 = vcombine.high %v3491_v23, %v3523_v24  ;;  %v2845_v5 = vpop.permute.xlu0 %2844 }
 0xb6f   :  { %v3172_v54 = vcombine.low %v2821_v43, %v2845_v5  ;;  %v3173_v12 = vcombine.high %v2821_v43, %v2845_v5 }
 0xb70   :  { %v6035_v29 = vpack.c.bf16 %v3664_v26, %v3528_v18  ;;  %v6043_v46 = vpack.c.bf16 %v3665_v2, %v3529_v21  ;;  %v7112_v41 = vpack.c.bf16 %v3666_v38, %v3530_v32  ;;  %v7114_v40 = vpack.c.bf16 %v3667_v39, %v3531_v37 }
 0xb71   :  { %v3180_v6 = vrot.slane %v3172_v54, %v6381_v8 }
 0xb72   :  { %6036 = vmatprep.subr.bf16.mxu1 %v6035_v29  ;;  %6044 = vmatprep.subr.bf16.mxu0 %v6043_v46 }
 0xb73   :  { %6038 = vmatpush3.bf16.msra.mxu1 %v6035_v29  ;;  %6046 = vmatpush3.bf16.msra.mxu0 %v6043_v46  ;;  %v3220_v31 = vcombine.low %v3164_v53, %v3180_v6  ;;  %v3221_v7 = vcombine.high %v3164_v53, %v3180_v6 }
 0xb75   :  { %v3228_v56 = vrot.slane %v3220_v31, %v6384_v15  ;;  %v3235_v28 = vrot.slane %v3221_v7, %v6384_v15 }
 0xb77   :  { %v5468_v17 = vcombine.low %v3228_v56, %v3235_v28  ;;  %v5470_v25 = vcombine.high %v3228_v56, %v3235_v28 }
 0xb79   :  { %v3683_v58 = vrot.slane %v5468_v17, %v6381_v8  ;;  %v3699_v37 = vrot.slane %v5470_v25, %v6381_v8 }
 0xb7b   :  { %v3748_v54 = vcombine.low %v3683_v58, %v3699_v37  ;;  %v3749_v6 = vcombine.high %v3683_v58, %v3699_v37 }
 0xb7d   :  { %v3763_v28 = vrot.slane %v3749_v6, %v6384_v15 }
 0xb95   :  { %v4332_v48 = vpop.xlane.xlu1 %4331 }
 0xb96   :  { %v4342_v50 = vsub.f32 %v7009_v49, %v4332_v48  ;;  %v3187_v49 = vrot.slane %v3173_v12, %v6381_v8 }
 0xb98   :  { %v4356_v3 = vmul.f32 1.442695, %v4342_v50  ;;  %v3236_v9 = vcombine.low %v3171_v57, %v3187_v49  ;;  %v3237_v10 = vcombine.high %v3171_v57, %v3187_v49 }
 0xb99   :  { %v2835_v11 = vpop.permute.xlu1 %2834 }
 0xb9a   :  { %6195 = vpow2.f32 %v4356_v3  ;;  %v3244_v19 = vrot.slane %v3236_v9, %v6384_v15  ;;  %v3251_v20 = vrot.slane %v3237_v10, %v6384_v15  ;;  %v3292_v22 = vcombine.low %v2811_v33, %v2835_v11 }
 0xb9b   :  { %v3293_v23 = vcombine.high %v2811_v33, %v2835_v11  ;;  %v3756_v10 = vrot.slane %v3748_v54, %v6384_v15 }
 0xb9c   :  { %v5472_v26 = vcombine.low %v3244_v19, %v3251_v20  ;;  %v5474_v2 = vcombine.high %v3244_v19, %v3251_v20  ;;  %v3300_v29 = vrot.slane %v3292_v22, %v6381_v8 }
 0xb9d   :  { %v3307_v46 = vrot.slane %v3293_v23, %v6381_v8 }
 0xb9e   :  { %v3715_v38 = vrot.slane %v5472_v26, %v6381_v8  ;;  %v3731_v39 = vrot.slane %v5474_v2, %v6381_v8 }
 0xba0   :  { %v3780_v52 = vcombine.low %v3715_v38, %v3731_v39  ;;  %v3781_v53 = vcombine.high %v3715_v38, %v3731_v39 }
 0xba2   :  { %v3788_v11 = vrot.slane %v3780_v52, %v6384_v15 }
 0xba4   :  { %v7117_v60 = vpop.eup %6195  ;;  %v3800_v26 = vcombine.low %v3756_v10, %v3788_v11 }
 0xba5   :  { %v4378_v42 = vsel %vm39_vm0, %v7117_v60, 0.0 }
 0xba6   :  { %4379 = vadd.xlane.f32.xlu1 %v4378_v42 }
 0xbde   :  { %v4365_v13 = vpop.xlane.xlu0 %4364 }
 0xbdf   :  { %v4368_v14 = vpop.xlane.xlu1 %4367 }
 0xbe0   :  { %6197 = vrcp.f32 %v4368_v14 }
 0xbe2   :  { %v4371_v24 = vpop.xlane.xlu0 %4370 }
 0xbe3   :  { %v2847_v18 = vpop.permute.xlu1 %2846 }
 0xbe4   :  { %v3308_v21 = vcombine.low %v2823_v44, %v2847_v18  ;;  %v3309_v32 = vcombine.high %v2823_v44, %v2847_v18 }
 0xbe6   :  { %v3316_v34 = vrot.slane %v3308_v21, %v6381_v8  ;;  %v3323_v55 = vrot.slane %v3309_v32, %v6381_v8  ;;  %v4362_v36 = vpop.xlane.xlu0 %4361  ;;  %v3801_v21 = vcombine.high %v3756_v10, %v3788_v11 }
 0xbe7   :  { %6199 = vrcp.f32 %v4362_v36 }
 0xbe8   :  { %v3356_v33 = vcombine.low %v3300_v29, %v3316_v34  ;;  %v3357_v43 = vcombine.high %v3300_v29, %v3316_v34  ;;  %v3372_v44 = vcombine.low %v3307_v46, %v3323_v55  ;;  %v3373_v48 = vcombine.high %v3307_v46, %v3323_v55 }
 0xbe9   :  { %6201 = vrcp.f32 %v4365_v13  ;;  %v3795_v13 = vrot.slane %v3781_v53, %v6384_v15 }
 0xbea   :  { %v6198_v50 = vpop.eup %6197  ;;  %v3364_v3 = vrot.slane %v3356_v33, %v6384_v15  ;;  %v3371_v42 = vrot.slane %v3357_v43, %v6384_v15  ;;  %v3380_v35 = vrot.slane %v3372_v44, %v6384_v15  ;;  %v3387_v4 = vrot.slane %v3373_v48, %v6384_v15 }
 0xbeb   :  { %v4394_v5 = vmul.f32 %v6198_v50, %v7046_v59  ;;  %6203 = vrcp.f32 %v4371_v24  ;;  %v3802_v32 = vcombine.low %v3763_v28, %v3795_v13  ;;  %v3803_v58 = vcombine.high %v3763_v28, %v3795_v13 }
 0xbec   :  { %v5476_v12 = vcombine.low %v3364_v3, %v3371_v42  ;;  %v5478_v63 = vcombine.high %v3364_v3, %v3371_v42  ;;  %v5480_v49 = vcombine.low %v3380_v35, %v3387_v4  ;;  %v5482_v57 = vcombine.high %v3380_v35, %v3387_v4 }
 0xbed   :  { %5833 = vmatprep.mubr.msk.f32.mxu0 %vm39_vm0, %v4394_v5 }
 0xbee   :  { %v3819_v31 = vrot.slane %v5476_v12, %v6381_v8  ;;  %v3835_v7 = vrot.slane %v5478_v63, %v6381_v8  ;;  %v3851_v9 = vrot.slane %v5480_v49, %v6381_v8  ;;  %v3867_v59 = vrot.slane %v5482_v57, %v6381_v8 }
 0xbf0   :  { %v3884_v56 = vcombine.low %v3819_v31, %v3835_v7  ;;  %v3885_v19 = vcombine.high %v3819_v31, %v3835_v7  ;;  %v3916_v14 = vcombine.low %v3851_v9, %v3867_v59  ;;  %v3917_v17 = vcombine.high %v3851_v9, %v3867_v59 }
 0xbf1   :  { %v6200_v20 = vpop.eup %6199 }
 0xbf2   :  { %v4392_v22 = vmul.f32 %v6200_v20, %v7058_v61  ;;  %v3892_v23 = vrot.slane %v3884_v56, %v6384_v15  ;;  %v3899_v24 = vrot.slane %v3885_v19, %v6384_v15  ;;  %v3924_v2 = vrot.slane %v3916_v14, %v6384_v15 }
 0xbf3   :  { %v4374_v25 = vpop.xlane.xlu0 %4373  ;;  %v3931_v18 = vrot.slane %v3917_v17, %v6384_v15  ;;  %v6202_v55 = vpop.eup %6201 }
 0xbf4   :  { %6205 = vrcp.f32 %v4374_v25  ;;  %5822 = vmatprep.mubr.msk.f32.mxu1 %vm39_vm0, %v4392_v22  ;;  %v3936_v29 = vcombine.low %v3892_v23, %v3924_v2  ;;  %v3937_v46 = vcombine.high %v3892_v23, %v3924_v2  ;;  %v4393_v44 = vmul.f32 %v6202_v55, %v7044_v51 }
 0xbf5   :  { %v3938_v34 = vcombine.low %v3899_v24, %v3931_v18  ;;  %v3939_v61 = vcombine.high %v3899_v24, %v3931_v18  ;;  %v6204_v43 = vpop.eup %6203 }
 0xbf6   :  { %v6039_v37 = vpack.c.bf16 %v3936_v29, %v3800_v26  ;;  %v6047_v38 = vpack.c.bf16 %v3937_v46, %v3801_v21  ;;  %v4395_v48 = vmul.f32 %v6204_v43, %v7052_v1 }
 0xbf7   :  { %v4377_v36 = vpop.xlane.xlu0 %4376  ;;  %v6055_v39 = vpack.c.bf16 %v3938_v34, %v3802_v32  ;;  %v6063_v33 = vpack.c.bf16 %v3939_v61, %v3803_v58 }
 0xbf8   :  { %6207 = vrcp.f32 %v4377_v36  ;;  %6040 = vmatprep.subr.bf16.mxu1 %v6039_v37  ;;  %6048 = vmatprep.subr.bf16.mxu0 %v6047_v38 }
 0xbf9   :  { %6042 = vmatpush3.bf16.msra.mxu1 %v6039_v37  ;;  %6050 = vmatpush3.bf16.msra.mxu0 %v6047_v38 }
 0xbfa   :  { %6052 = vmatprep.subr.bf16.mxu1 %v7112_v41  ;;  %6060 = vmatprep.subr.bf16.mxu0 %v7114_v40 }
 0xbfb   :  { %v4383_v42 = vpop.xlane.xlu0 %4382 }
 0xbfc   :  { %5823 = vmatmul.mubr.msk.f32.vlgmr.msra.gmra.mrb[12].mxu1 %vm39_vm0, %v4393_v44  ;;  %5834 = vmatmul.mubr.msk.f32.vlgmr.msra.gmra.mrb[22].mxu0 %vm39_vm0, %v4395_v48  ;;  %6209 = vrcp.f32 %v4383_v42 }
 0xbfd   :  { %6054 = vmatpush3.bf16.msra.mxu1 %v7112_v41  ;;  %6062 = vmatpush3.bf16.msra.mxu0 %v7114_v40 }
 0xbfe   :  { %v6206_v50 = vpop.eup %6205  ;;  %6056 = vmatprep.subr.bf16.mxu1 %v6055_v39  ;;  %6064 = vmatprep.subr.bf16.mxu0 %v6063_v33 }
 0xbff   :  { %v4396_v3 = vmul.f32 %v6206_v50, %v7078_v47 }
 0xc01   :  { %5844 = vmatprep.mubr.msk.f32.mxu1 %vm39_vm0, %v4396_v3  ;;  %6058 = vmatpush3.bf16.msra.mxu1 %v6055_v39 }
 0xc02   :  { %v6208_v51 = vpop.eup %6207  ;;  %6066 = vmatpush3.bf16.msra.mxu0 %v6063_v33 }
 0xc03   :  { %v4397_v1 = vmul.f32 %v6208_v51, %v7092_v27 }
 0xc05   :  { %5845 = vmatmul.mubr.msk.f32.vlgmr.msra.gmra.mrb[14].mxu1 %vm39_vm0, %v4397_v1 }
 0xc06   :  { %v6210_v41 = vpop.eup %6209 }
 0xc07   :  { %v4399_v5 = vmul.f32 %v6210_v41, %v7094_v16 }
 0xc33   :  { %v4380_v35 = vpop.xlane.xlu1 %4379 }
 0xc34   :  { %6211 = vrcp.f32 %v4380_v35 }
 0xc3e   :  { %v6212_v4 = vpop.eup %6211 }
 0xc3f   :  { %v4398_v40 = vmul.f32 %v6212_v4, %v7117_v60 }
 0xc41   :  { %5855 = vmatprep.mubr.msk.f32.mxu0 %vm39_vm0, %v4398_v40 }
 0xc42   :  { %5856 = vmatmul.mubr.msk.f32.vlgmr.msra.gmra.mrb[24].mxu0 %vm39_vm0, %v4399_v5 }
 0xccf   :  { %v5824_v47 = vpop.f32.mrb[12].mxu1  ;;  %v5835_v54 = vpop.f32.mrb[22].mxu0 }
 0xcd0   :  { %v4472_v52 = vpop.f32.mrb[13].mxu1  ;;  %v4553_v27 = vpop.f32.mrb[23].mxu0 }
 0xcd8   :  { %v5846_v12 = vpop.f32.mrb[14].mxu1 }
 0xcd9   :  { %v4792_v63 = vcombine.low %v5824_v47, %v5846_v12  ;;  %v4793_v6 = vcombine.high %v5824_v47, %v5846_v12  ;;  %v4634_v53 = vpop.f32.mrb[15].mxu1 }
 0xcda   :  { %v4724_v49 = vcombine.low %v4472_v52, %v4634_v53  ;;  %v4725_v57 = vcombine.high %v4472_v52, %v4634_v53 }
 0xcdb   :  { %v4800_v10 = vrot.slane %v4792_v63, %v6381_v8  ;;  %v4807_v11 = vrot.slane %v4793_v6, %v6381_v8 }
 0xcdc   :  { %v4732_v13 = vrot.slane %v4724_v49, %v6381_v8  ;;  %v4739_v19 = vrot.slane %v4725_v57, %v6381_v8 }
 0xd15   :  { %v5857_v31 = vpop.f32.mrb[24].mxu0 }
 0xd16   :  { %v4808_v7 = vcombine.low %v5835_v54, %v5857_v31  ;;  %v4809_v9 = vcombine.high %v5835_v54, %v5857_v31  ;;  %v4715_v60 = vpop.f32.mrb[25].mxu0 }
 0xd17   :  { %v4740_v59 = vcombine.low %v4553_v27, %v4715_v60  ;;  %v4741_v16 = vcombine.high %v4553_v27, %v4715_v60 }
 0xd18   :  { %v4816_v56 = vrot.slane %v4808_v7, %v6381_v8  ;;  %v4823_v28 = vrot.slane %v4809_v9, %v6381_v8 }
 0xd19   :  { %v4748_v20 = vrot.slane %v4740_v59, %v6381_v8  ;;  %v4755_v14 = vrot.slane %v4741_v16, %v6381_v8  ;;  %v5520_v59 = vld [vmem:[%s7358_s4 + $0x88] sm:$0xff]  ;;  %v5521_v16 = vld [vmem:[%s7358_s4 + $0x90] sm:$0xff] }
 0xd1a   :  { %v4824_v17 = vcombine.low %v4800_v10, %v4816_v56  ;;  %v4825_v22 = vcombine.high %v4800_v10, %v4816_v56  ;;  %v4840_v23 = vcombine.low %v4807_v11, %v4823_v28  ;;  %v4841_v24 = vcombine.high %v4807_v11, %v4823_v28  ;;  %v5522_v10 = vld [vmem:[%s7358_s4 + $0x98] sm:$0xff] }
 0xd1b   :  { %v4756_v25 = vcombine.low %v4732_v13, %v4748_v20  ;;  %v4757_v26 = vcombine.high %v4732_v13, %v4748_v20  ;;  %v4772_v2 = vcombine.low %v4739_v19, %v4755_v14  ;;  %v4773_v18 = vcombine.high %v4739_v19, %v4755_v14 }
 0xd1c   :  { %v4832_v21 = vrot.slane %v4824_v17, %v6384_v15  ;;  %v4839_v32 = vrot.slane %v4825_v22, %v6384_v15  ;;  %v4848_v58 = vrot.slane %v4840_v23, %v6384_v15  ;;  %v4855_v29 = vrot.slane %v4841_v24, %v6384_v15 }
 0xd1d   :  { %v4764_v46 = vrot.slane %v4756_v25, %v6384_v15  ;;  %v4771_v34 = vrot.slane %v4757_v26, %v6384_v15  ;;  %v4780_v61 = vrot.slane %v4772_v2, %v6384_v15  ;;  %v4787_v55 = vrot.slane %v4773_v18, %v6384_v15 }
 0xd1e   :  { %v4928_v36 = vcombine.low %v4832_v21, %v4839_v32  ;;  %v5517_v37 = vcombine.high %v4832_v21, %v4839_v32  ;;  %v4944_v38 = vcombine.low %v4848_v58, %v4855_v29  ;;  %v5518_v39 = vcombine.high %v4848_v58, %v4855_v29 }
 0xd1f   :  { %v4860_v33 = vcombine.low %v4764_v46, %v4771_v34  ;;  %v5515_v43 = vcombine.high %v4764_v46, %v4771_v34  ;;  %v4876_v44 = vcombine.low %v4780_v61, %v4787_v55  ;;  %v5516_v48 = vcombine.high %v4780_v61, %v4787_v55  ;;  %v7235_v55 = vld [vmem:[%s7360_s6] sm:$0xff] }
 0xd20   :  { %v4935_v50 = vrot.slane %v4928_v36, %v6381_v8  ;;  %v4943_v3 = vrot.slane %v5517_v37, %v6381_v8  ;;  %v4951_v51 = vrot.slane %v4944_v38, %v6381_v8  ;;  %v4959_v1 = vrot.slane %v5518_v39, %v6381_v8 }
 0xd21   :  { %v4867_v42 = vrot.slane %v4860_v33, %v6381_v8  ;;  %v4875_v35 = vrot.slane %v5515_v43, %v6381_v8  ;;  %v4883_v41 = vrot.slane %v4876_v44, %v6381_v8  ;;  %v4891_v4 = vrot.slane %v5516_v48, %v6381_v8  ;;  %v5519_v8 = vld [vmem:[%s7358_s4 + $0x80] sm:$0xff] }
 0xd22   :  { %v4960_v40 = vcombine.low %v4935_v50, %v4943_v3  ;;  %v4976_v5 = vcombine.low %v4951_v51, %v4959_v1  ;;  %v4961_v47 = vcombine.high %v4935_v50, %v4943_v3  ;;  %v4977_v54 = vcombine.high %v4951_v51, %v4959_v1 }
 0xd23   :  { %v4892_v52 = vcombine.low %v4867_v42, %v4875_v35  ;;  %v4908_v27 = vcombine.low %v4883_v41, %v4891_v4  ;;  %v4893_v12 = vcombine.high %v4867_v42, %v4875_v35  ;;  %v4909_v63 = vcombine.high %v4883_v41, %v4891_v4 }
 0xd24   :  { %v4968_v6 = vrot.slane %v4960_v40, %v6384_v15  ;;  %v4984_v53 = vrot.slane %v4976_v5, %v6384_v15  ;;  %v4975_v49 = vrot.slane %v4961_v47, %v6384_v15  ;;  %v4991_v57 = vrot.slane %v4977_v54, %v6384_v15  ;;  %v5525_v5 = vld [vmem:[%s7358_s4 + $0xa0] sm:$0xff]  ;;  %v5526_v47 = vld [vmem:[%s7358_s4 + $0xa8] sm:$0xff]  ;;  %v5527_v54 = vld [vmem:[%s7358_s4 + $0xb0] sm:$0xff] }
 0xd25   :  { %v4900_v31 = vrot.slane %v4892_v52, %v6384_v15  ;;  %v4916_v7 = vrot.slane %v4908_v27, %v6384_v15  ;;  %v4907_v9 = vrot.slane %v4893_v12, %v6384_v15  ;;  %v4923_v60 = vrot.slane %v4909_v63, %v6384_v15  ;;  %v5528_v27 = vld [vmem:[%s7358_s4 + $0xb8] sm:$0xff]  ;;  %v5262_v63 = vld [vmem:[%s7359_s5] sm:$0xff] }
 0xd26   :  { %v4993_v11 = vcombine.high %v4968_v6, %v4984_v53  ;;  %v4994_v56 = vcombine.low %v4975_v49, %v4991_v57  ;;  %v4995_v28 = vcombine.high %v4975_v49, %v4991_v57  ;;  %v4992_v13 = vcombine.low %v4968_v6, %v4984_v53  ;;  %v5263_v6 = vld [vmem:[%s7359_s5 + $0x8] sm:$0xff]  ;;  %v5264_v53 = vld [vmem:[%s7359_s5 + $0x10] sm:$0xff]  ;;  %v5265_v57 = vld [vmem:[%s7359_s5 + $0x18] sm:$0xff] }
 0xd27   :  { %v4925_v19 = vcombine.high %v4900_v31, %v4916_v7  ;;  %v4927_v20 = vcombine.high %v4907_v9, %v4923_v60  ;;  %v4926_v14 = vcombine.low %v4907_v9, %v4923_v60  ;;  %v4924_v15 = vcombine.low %v4900_v31, %v4916_v7  ;;  %v5266_v31 = vld [vmem:[%s7359_s5 + $0x20] sm:$0xff]  ;;  %v5267_v7 = vld [vmem:[%s7359_s5 + $0x28] sm:$0xff]  ;;  %v5268_v60 = vld [vmem:[%s7359_s5 + $0x30] sm:$0xff] }
 0xd28   :  { %5000 = vrot.lane.b32.xlu1 %v4993_v11, %s6264_s16  ;;  %v6067_v17 = vpack.c.bf16 %v5520_v59, %v5519_v8  ;;  %v6071_v22 = vpack.c.bf16 %v5522_v10, %v5521_v16  ;;  %v5033_v61 = vsub.s32 4, %v6331_v30  ;;  %v6075_v52 = vpack.c.bf16 %v5526_v47, %v5525_v5  ;;  %v5269_v59 = vld [vmem:[%s7359_s5 + $0x38] sm:$0xff]  ;;  %v5270_v10 = vld [vmem:[%s7359_s5 + $0x40] sm:$0xff]  ;;  %v5271_v11 = vld [vmem:[%s7359_s5 + $0x48] sm:$0xff] }
 0xd29   :  { %4998 = vrot.lane.b32.xlu0 %v4925_v19, %s6264_s16  ;;  %v6079_v12 = vpack.c.bf16 %v5528_v27, %v5527_v54  ;;  %v6083_v49 = vpack.c.bf16 %v5263_v6, %v5262_v63  ;;  %v6087_v8 = vpack.c.bf16 %v5265_v57, %v5264_v53  ;;  %v6091_v9 = vpack.c.bf16 %v5267_v7, %v5266_v31 }
 0xd2a   :  { %6068 = vmatprep.subr.bf16.mxu1 %v6067_v17  ;;  %v5034_v36 = vrot.slane %v7235_v55, %v5033_v61  ;;  %6076 = vmatprep.subr.bf16.mxu0 %v6075_v52  ;;  %v6095_v16 = vpack.c.bf16 %v5269_v59, %v5268_v60 }
 0xd2b   :  { %6070 = vmatpush3.bf16.msra.mxu1 %v6067_v17  ;;  %6078 = vmatpush3.bf16.msra.mxu0 %v6075_v52 }
 0xd2c   :  { %5008 = vrot.lane.b32.xlu1 %v4994_v56, %s6265_s24  ;;  %6072 = vmatprep.subr.bf16.mxu1 %v6071_v22  ;;  %v6099_v56 = vpack.c.bf16 %v5271_v11, %v5270_v10 }
 0xd2d   :  { %5014 = vrot.lane.b32.xlu0 %v4927_v20, %s6266_s25  ;;  %6080 = vmatprep.subr.bf16.mxu0 %v6079_v12  ;;  %v5274_v20 = vld [vmem:[%s7359_s5 + $0x60] sm:$0xff] }
 0xd2f   :  { %6074 = vmatpush3.bf16.msra.mxu1 %v6071_v22  ;;  %6082 = vmatpush3.bf16.msra.mxu0 %v6079_v12  ;;  %v5280_v12 = vsub.s32 6, %v6331_v30 }
 0xd30   :  { %5006 = vrot.lane.b32.xlu1 %v4926_v14, %s6265_s24  ;;  %6084 = vmatprep.subr.bf16.mxu1 %v6083_v49  ;;  %v5275_v14 = vld [vmem:[%s7359_s5 + $0x68] sm:$0xff] }
 0xd31   :  { %v5281_v63 = vrot.slane %v7235_v55, %v5280_v12 }
 0xd34   :  { %5016 = vrot.lane.b32.xlu1 %v4995_v28, %s6266_s25  ;;  %v5272_v28 = vld [vmem:[%s7359_s5 + $0x50] sm:$0xff] }
 0xd9a   :  { %v5001_v23 = vpop.permute.xlu1 %5000 }
 0xd9b   :  { %v4999_v24 = vpop.permute.xlu0 %4998  ;;  %v5021_v58 = vsel %vm1067_vm5, %v4992_v13, %v5001_v23  ;;  %v5273_v13 = vld [vmem:[%s7359_s5 + $0x58] sm:$0xff] }
 0xd9c   :  { %v5020_v26 = vsel %vm1067_vm5, %v4924_v15, %v4999_v24  ;;  %v6103_v19 = vpack.c.bf16 %v5273_v13, %v5272_v28  ;;  %v6107_v15 = vpack.c.bf16 %v5275_v14, %v5274_v20 }
 0xd9e   :  { %v5009_v25 = vpop.permute.xlu1 %5008 }
 0xd9f   :  { %v5015_v18 = vpop.permute.xlu0 %5014  ;;  %v5023_v29 = vsel %vm1416_vm7, %v5021_v58, %v5009_v25 }
 0xda2   :  { %v5007_v2 = vpop.permute.xlu1 %5006 }
 0xda3   :  { %v5022_v21 = vsel %vm1416_vm7, %v5020_v26, %v5007_v2 }
 0xda4   :  { %v5024_v32 = vsel %vm2129_vm8, %v5022_v21, %v5015_v18 }
 0xda5   :  { %5866 = vmatprep.mubr.msk.f32.mxu1 %vm39_vm0, %v5024_v32 }
 0xda6   :  { %v5017_v46 = vpop.permute.xlu1 %5016 }
 0xda7   :  { %v5025_v34 = vsel %vm2129_vm8, %v5023_v29, %v5017_v46 }
 0xda8   :  { %5867 = vmatmul.mubr.msk.f32.vlgmr.msra.gmra.mrb[16].mxu1 %vm39_vm0, %v5025_v34 }
 0xda9   :  { %6086 = vmatpush3.bf16.msra.mxu1 %v6083_v49 }
 0xdaa   :  { %6088 = vmatprep.subr.bf16.mxu1 %v6087_v8 }
 0xdad   :  { %6090 = vmatpush3.bf16.msra.mxu1 %v6087_v8 }
 0xdae   :  { %6092 = vmatprep.subr.bf16.mxu1 %v6091_v9 }
 0xdb1   :  { %6094 = vmatpush3.bf16.msra.mxu1 %v6091_v9 }
 0xdb2   :  { %6096 = vmatprep.subr.bf16.mxu1 %v6095_v16 }
 0xdb5   :  { %6098 = vmatpush3.bf16.msra.mxu1 %v6095_v16 }
 0xdb6   :  { %6100 = vmatprep.subr.bf16.mxu1 %v6099_v56 }
 0xdb9   :  { %6102 = vmatpush3.bf16.msra.mxu1 %v6099_v56 }
 0xdba   :  { %6104 = vmatprep.subr.bf16.mxu1 %v6103_v19 }
 0xdbd   :  { %6106 = vmatpush3.bf16.msra.mxu1 %v6103_v19 }
 0xdbe   :  { %6108 = vmatprep.subr.bf16.mxu1 %v6107_v15 }
 0xdc1   :  { %6110 = vmatpush3.bf16.msra.mxu1 %v6107_v15 }
 0xe7b   :  { %v5868_v37 = vpop.f32.mrb[16].mxu1 }
 0xe7c   :  { %v5113_v38 = vadd.f32 %v5868_v37, %v5034_v36  ;;  %v5107_v39 = vpop.f32.mrb[17].mxu1 }
 0xe7d   :  { %v5108_v33 = vadd.f32 %v5107_v39, %v5034_v36 }
 0xe7e   :  { %v7241_v43 = vadd.f32 %v5113_v38, %v6672_v62  ;;  %v6226_v38 = vld [vmem:[%s7360_s6 + $0x8] sm:$0xff] }
 0xe7f   :  { %v7244_v44 = vadd.f32 %v5108_v33, %v6677_v0  ;;  %v5159_v39 = vrot.slane %v6226_v38, %v2139_v45  ;;  %v5167_v33 = vrot.slane %v6226_v38, %v5033_v61  ;;  %v5276_v45 = vld [vmem:[%s7359_s5 + $0x70] sm:$0xff]  ;;  %v5277_v61 = vld [vmem:[%s7359_s5 + $0x78] sm:$0xff]  ;;  %s6267_s5 = smov [#allocation2]  }
 0xe80   :  { %v5121_v48 = vsel %vm39_vm0, %v7241_v43, 0.0  ;;  %s5366_s23 = sshll.u32 %s6267_s5, 4  ;;  %s5367_s23 = int_to_ptr.vmem [resolvable:$true] %s5366_s23 }
 0xe81   :  { %5122 = vadd.xlane.f32.xlu1 %v5121_v48  ;;  %v5118_v50 = vsel %vm39_vm0, %v7244_v44, 0.0  ;;  %s6227_s4 = scalar_lea.vmem %s5367_s23, 256  ;;  %p6232_p1 = scmp.lt.s32.totalorder %s5367_s23, %s5367_s23 }
 0xe82   :  { %5119 = vadd.xlane.f32.xlu0 %v5118_v50  ;;  %p6228_p0 = scmp.ne.s32.totalorder %s5367_s23, %s6227_s4  ;;  %p6233_p2 = scmp.lt.s32.totalorder %s6227_s4, %s6227_s4 }
 0xe84   :  { %p6234_p3 = por %p6233_p2, %p6232_p1 }
 0xe86   :  { %p6235_p4 = pnand %p6234_p3, %p6228_p0 }
 0xf0e   :  { %v5123_v3 = vpop.xlane.xlu1 %5122 }
 0xf0f   :  { %v5125_v51 = vmul.f32 0.03125, %v5123_v3  ;;  %v5120_v1 = vpop.xlane.xlu0 %5119 }
 0xf10   :  { %v5124_v42 = vmul.f32 0.03125, %v5120_v1 }
 0xf11   :  { %v7251_v35 = vsub.f32 %v7241_v43, %v5125_v51 }
 0xf12   :  { %v7254_v62 = vsub.f32 %v7244_v44, %v5124_v42 }
 0xf13   :  { %v5129_v4 = vmul.f32 %v7251_v35, %v7251_v35  ;;  %v5161_v51 = vmul.f32 %v5159_v39, %v7251_v35  ;;  %v5177_v35 = vsub.s32 5, %v6331_v30 }
 0xf14   :  { %v5128_v0 = vmul.f32 %v7254_v62, %v7254_v62  ;;  %v5160_v48 = vmul.f32 %v5159_v39, %v7254_v62  ;;  %v6111_v62 = vpack.c.bf16 %v5277_v61, %v5276_v45 }
 0xf15   :  { %v5133_v40 = vsel %vm39_vm0, %v5129_v4, 0.0  ;;  %v5178_v4 = vrot.slane %v7235_v55, %v5177_v35 }
 0xf16   :  { %v5130_v41 = vsel %vm39_vm0, %v5128_v0, 0.0  ;;  %6112 = vmatprep.subr.bf16.mxu1 %v6111_v62 }
 0xf17   :  { %5131 = vadd.xlane.f32.xlu0 %v5130_v41  ;;  %6114 = vmatpush3.bf16.msra.mxu1 %v6111_v62 }
 0xf1b   :  { %5134 = vadd.xlane.f32.xlu0 %v5133_v40 }
 0xfa4   :  { %v5132_v17 = vpop.xlane.xlu0 %5131 }
 0xfa5   :  { %v5136_v22 = vmul.f32 0.032258064, %v5132_v17 }
 0xfa7   :  { %6213 = vrsqrt.f32 %v5136_v22  ;;  %vm5140_vm13 = vcmp.eq.f32.partialorder %v5136_v22, inf  ;;  %v5143_v2 = vand.u32 2147483648, %v5136_v22  ;;  %vm5142_vm14 = vcmp.eq.f32.partialorder %v5136_v22, 0.0 }
 0xfa8   :  { %v5135_v23 = vpop.xlane.xlu0 %5134 }
 0xfa9   :  { %v5137_v24 = vmul.f32 0.032258064, %v5135_v23 }
 0xfab   :  { %6215 = vrsqrt.f32 %v5137_v24  ;;  %vm5147_vm15 = vcmp.eq.f32.partialorder %v5137_v24, inf  ;;  %v5150_v46 = vand.u32 2147483648, %v5137_v24  ;;  %vm5149_vm1 = vcmp.eq.f32.partialorder %v5137_v24, 0.0 }
 0xfb1   :  { %v6214_v25 = vpop.eup %6213 }
 0xfb2   :  { %v5139_v26 = vmul.f32 %v6214_v25, %v5136_v22 }
 0xfb4   :  { %v5141_v18 = vsel %vm5140_vm13, %v5136_v22, %v5139_v26 }
 0xfb5   :  { %v6216_v21 = vpop.eup %6215  ;;  %v5144_v32 = vsel %vm5142_vm14, %v5143_v2, %v5141_v18 }
 0xfb6   :  { %v5146_v58 = vmul.f32 %v6216_v21, %v5137_v24  ;;  %v5152_v29 = vadd.f32 1e-06, %v5144_v32 }
 0xfb8   :  { %v5148_v34 = vsel %vm5147_vm15, %v5137_v24, %v5146_v58  ;;  %6217 = vrcp.f32 %v5152_v29 }
 0xfb9   :  { %v5151_v36 = vsel %vm5149_vm1, %v5150_v46, %v5148_v34 }
 0xfba   :  { %v5153_v37 = vadd.f32 1e-06, %v5151_v36 }
 0xfbc   :  { %6219 = vrcp.f32 %v5153_v37 }
 0xfc2   :  { %v6218_v50 = vpop.eup %6217 }
 0xfc3   :  { %v5162_v3 = vmul.f32 %v6218_v50, %v5160_v48 }
 0xfc5   :  { %v5168_v1 = vadd.f32 %v5167_v33, %v5162_v3 }
 0xfc6   :  { %v6220_v42 = vpop.eup %6219 }
 0xfc7   :  { %5877 = vmatprep.mubr.msk.f32.mxu0 %vm39_vm0, %v5168_v1  ;;  %v5163_v0 = vmul.f32 %v6220_v42, %v5161_v51 }
 0xfc9   :  { %v5169_v41 = vadd.f32 %v5167_v33, %v5163_v0 }
 0xfcb   :  { %5878 = vmatmul.mubr.msk.f32.vlgmr.msra.gmra.mrb[26].mxu0 %vm39_vm0, %v5169_v41 }
0x109e   :  { %v5879_v40 = vpop.f32.mrb[26].mxu0 }
0x109f   :  { %v5257_v5 = vadd.f32 %v5879_v40, %v5178_v4  ;;  %v5251_v47 = vpop.f32.mrb[27].mxu0 }
0x10a0   :  { %v5252_v54 = vadd.f32 %v5251_v47, %v5178_v4 }
0x10a1   :  { %v5261_v27 = vmax.f32 %v5257_v5, 0.0 }
0x10a2   :  { %v5260_v52 = vmax.f32 %v5252_v54, 0.0 }
0x10a4   :  { %5912 = vmatprep.mubr.f32.mxu1 %v5260_v52 }
0x10a5   :  { %5913 = vmatmul.mubr.f32.vlgmr.msra.gmra.mrb[18].mxu1 %v5261_v27 }
0x1178   :  { %v5914_v6 = vpop.f32.mrb[18].mxu1 }
0x1179   :  { %v5354_v53 = vadd.f32 %v5914_v6, %v5281_v63  ;;  %v5348_v49 = vpop.f32.mrb[19].mxu1 }
0x117a   :  { %v5349_v57 = vadd.f32 %v5348_v49, %v5281_v63 }
0x117b   :  { %v5358_v8 = vadd.f32 %v5354_v53, %v7241_v43 }
0x117c   :  { %v5357_v31 = vadd.f32 %v5349_v57, %v7244_v44 }
0x117d   :  { %5360 = vst.msk [vmem:[#allocation2 + $0x8] sm:$0xff] %vm39_vm0, %v5358_v8 }
0x117e   :  { %5359 = vst.msk [vmem:[#allocation2] sm:$0xff] %vm39_vm0, %v5357_v31 }
0x117f   :  { %6238 = shalt.err (!%p6235_p4)
}
0x1180   :  { %s6239_s17 = scalar_lea.hbm %s7361_s7, 256 }
0x1181   :  { %p6240_p5 = scmp.ne.s32.totalorder %s7361_s7, %s6239_s17  ;;  %p6243_p6 = scmp.lt.u32.totalorder %s6239_s17, %s7361_s7 }
0x1183   :  { %p6245_p7 = pnand %p6243_p6, %p6240_p5 }
0x1185   :  { %6248 = shalt.err (!%p6245_p7)
}
0x1186   :  { %s6268_s28 = smov 128  }
0x1187   :  { %5372 = dma.vmem_to_hbm [thread:$0]  %s5367_s23, 256, %s7361_s7, [#allocation3], %s6268_s28, %s6268_s28, %s6264_s16  }
0x1188   :  { %6249 = dma.done.wait [#allocation3], 256  }
0x1189   :  { %6250 = vsyncadd [#allocation3], 4294967040 }
0x118a   :  { %5376 = vsyncpa [#allocation3], 1 }

</bundles_post_ra>
